<compile_context>
chip_gen: v7x
topology: tpu7x:2x2x1
jax: 0.10.0
libtpu: 0.0.40
codegen_flags: <defaults>
</compile_context>

<pallas_src>
import math

import jax
import jax.numpy as jnp
import numpy as np
from jax.experimental import pallas as pl
from jax.experimental.pallas import tpu as pltpu


# -----------------------------------------------------------------------------
# Fused kernel: all layers of EpisodeMultiheadAttention, grid = (num_layers,)
# -----------------------------------------------------------------------------
def _emha_kernel(cos_ref, sin_ref, key_hbm,
                 wx_ref, bx_ref, wout_ref, bout_ref,
                 wy_ref, by_ref, wxg_ref, bxg_ref,
                 q_out_ref, hid_ref, attn_ref, act_ref):
    N, D = act_ref.shape                    # N = B * L
    B, Q, _ = q_out_ref.shape
    L = attn_ref.shape[3]
    H = D // 2
    NL = pl.num_programs(0)
    layer = pl.program_id(0)

    # Layer 0: DMA the input activation straight from HBM into the resident
    # VMEM scratch (key is never held in a pipelined input buffer).
    @pl.when(layer == 0)
    def _():
        pltpu.sync_copy(key_hbm, act_ref)

    x = act_ref[...]                        # [N, D] f32  (== ori_query)
    cos = cos_ref[...]                      # [N, D]  = [ c ; c ]
    sin = sin_ref[...]                      # [N, D]  = [-s ; s ]

    def lin(v, w_ref, b_ref):
        # bf16 MXU operands, f32 accumulation, f32 bias add.
        return jnp.dot(v.astype(jnp.bfloat16), w_ref[0],
                       preferred_element_type=jnp.float32) + b_ref[0]

    # ---- fused x-side projection:  q' | k | v | x_r | x_z -------------------
    # (1/sqrt(D) folded into q' columns/bias at pack time)
    xp = lin(x, wx_ref, bx_ref)             # [N, 5D] f32
    q = xp[:, 0 * D:1 * D]
    k = xp[:, 1 * D:2 * D]
    v = xp[:, 2 * D:3 * D]
    xr = xp[:, 3 * D:4 * D]
    xz = xp[:, 4 * D:5 * D]

    # ---- RoPE in half-split layout (q/k columns permuted at pack time) ------
    def rope(t):
        # out = t * [c;c] + roll(t, H) * [-s;s]  == complex rotate of pairs
        return t * cos + pltpu.roll(t, H, axis=1) * sin

    qb = rope(q).reshape(B, L, D)
    kb = rope(k).reshape(B, L, D).astype(jnp.bfloat16)
    vb = v.reshape(B, L, D).astype(jnp.bfloat16)

    def attend_and_gate(q_rows, x_rows, xr_rows, xz_rows, nq):
        """Attention + out-proj + relu/residual + GRU-style gating for the
        last `nq` query rows (key positions L-nq .. L-1).
        q_rows: [B, nq, D]; x_rows/xr_rows/xz_rows: [B*nq, D]."""
        scores = jnp.einsum("bqd,bkd->bqk", q_rows.astype(jnp.bfloat16), kb,
                            preferred_element_type=jnp.float32)    # [B, nq, L]
        row = jax.lax.broadcasted_iota(jnp.int32, (nq, L), 0) + (L - nq)
        col = jax.lax.broadcasted_iota(jnp.int32, (nq, L), 1)
        scores = scores + jnp.where(col > row, jnp.float32(-1e30),
                                    jnp.float32(0.0))[None]
        m = jnp.max(scores, axis=-1, keepdims=True)
        p = jnp.exp(scores - m)
        attn_w = p * pl.reciprocal(jnp.sum(p, axis=-1, keepdims=True),
                                   approx=True)                    # [B, nq, L]
        ao = jnp.einsum("bqk,bkd->bqd", attn_w.astype(jnp.bfloat16), vb,
                        preferred_element_type=jnp.float32)        # [B, nq, D]
        ao = lin(ao.reshape(B * nq, D), wout_ref, bout_ref)
        o = jnp.maximum(ao, 0.0) + x_rows

        # fused o-side projection:  y_r | y_z | y_g
        yp = lin(o, wy_ref, by_ref)                                # [B*nq, 3D]
        r = jnp.maximum(xr_rows + yp[:, 0 * D:1 * D], 0.0)
        z = jnp.maximum(xz_rows + yp[:, 1 * D:2 * D], 0.0)
        h = jnp.tanh(lin(r * x_rows, wxg_ref, bxg_ref) + yp[:, 2 * D:3 * D])
        new = (1.0 - z) * x_rows + z * h                           # [B*nq, D]
        return new.reshape(B, nq, D), attn_w

    # ---- layers 0 .. NL-2: full-length query, carry activation --------------
    @pl.when(layer < NL - 1)
    def _():
        new, attn_w = attend_and_gate(qb, x, xr, xz, L)
        act_ref[...] = new.reshape(N, D)
        hid_ref[...] = new[:, L - Q:, :]                           # [B, Q, D]
        attn_ref[0] = attn_w[:, L - Q:, :]                         # [B, Q, L]

    # ---- last layer: only the last Q query rows are ever consumed -----------
    @pl.when(layer == NL - 1)
    def _():
        sl = lambda t: t.reshape(B, L, D)[:, L - Q:, :].reshape(B * Q, D)
        new, attn_w = attend_and_gate(qb[:, L - Q:, :],
                                      sl(x), sl(xr), sl(xz), Q)
        q_out_ref[...] = new                                       # [B, Q, D]
        attn_ref[0] = attn_w                                       # [B, Q, L]


# -----------------------------------------------------------------------------
# Pallas wrapper: EpisodeMultiheadAttention.forward (hidden_state=None path)
# -----------------------------------------------------------------------------
def episode_multihead_attention_pallas(key, query_length, packed, key_index):
    B, L, D = key.shape
    NL = packed["Wx"].shape[0]
    Q = query_length
    H = D // 2
    N = B * L
    HID = max(NL - 1, 1)

    key2 = key.reshape(N, D).astype(jnp.float32)

    # RoPE tables (theta=10000), pre-widened and pre-signed for the in-kernel
    # half-split roll formulation: cos=[c;c], sin=[-s;s].
    freqs = 1.0 / (10000.0 ** (jnp.arange(H, dtype=jnp.float32) * 2.0 / D))
    ang = key_index.astype(jnp.float32)[..., None] * freqs          # [B, L, H]
    ch = jnp.cos(ang).reshape(N, H)
    sh = jnp.sin(ang).reshape(N, H)
    cos_full = jnp.concatenate([ch, ch], axis=-1)                   # [N, D]
    sin_full = jnp.concatenate([-sh, sh], axis=-1)                  # [N, D]

    shared2 = lambda shape: pl.BlockSpec(shape, lambda l: (0, 0))
    per_layer = lambda shape: pl.BlockSpec(shape, lambda l: (l, 0, 0))

    in_specs = [
        shared2((N, D)),                     # cos   (resident, constant block)
        shared2((N, D)),                     # sin
        pl.BlockSpec(memory_space=pl.ANY),   # key   (raw HBM, copied at layer 0)
        per_layer((1, D, 5 * D)),            # Wx = [Wq'|Wk|Wv|Wxr|Wxz]   bf16
        per_layer((1, 1, 5 * D)),            # bx                         f32
        per_layer((1, D, D)),                # W_out                      bf16
        per_layer((1, 1, D)),                # b_out
        per_layer((1, D, 3 * D)),            # Wy = [Wyr|Wyz|Wyg]         bf16
        per_layer((1, 1, 3 * D)),            # by
        per_layer((1, D, D)),                # W_xg                       bf16
        per_layer((1, 1, D)),                # b_xg
    ]
    out_specs = (
        # encoded_query: single resident block, written only by the last layer.
        pl.BlockSpec((B, Q, D), lambda l: (0, 0, 0)),
        # next_hidden in final [B, Q, (NL-1)*D] layout: layer l writes feature
        # block l (clamped: the last layer revisits block NL-2 and leaves it
        # untouched, so no wrapper-side concat is needed).
        pl.BlockSpec((B, Q, D), lambda l: (0, 0, jnp.minimum(l, HID - 1))),
        pl.BlockSpec((1, B, Q, L), lambda l: (l, 0, 0, 0)),
    )
    out_shape = (
        jax.ShapeDtypeStruct((B, Q, D), jnp.float32),
        jax.ShapeDtypeStruct((B, Q, HID * D), jnp.float32),
        jax.ShapeDtypeStruct((NL, B, Q, L), jnp.float32),
    )

    # VMEM budget: 2x double-buffered bf16 weights (~20*D^2 bytes) + resident
    # cos/sin/act (3*N*D*4) + small outputs — far under 32 MiB at these and
    # moderately larger shapes; 32 MiB is <= every chip's physical VMEM.
    q_out, hid, attn = pl.pallas_call(
        _emha_kernel,
        out_shape=out_shape,
        grid_spec=pltpu.PrefetchScalarGridSpec(
            num_scalar_prefetch=0,
            grid=(NL,),
            in_specs=in_specs,
            out_specs=out_specs,
            scratch_shapes=[pltpu.VMEM((N, D), jnp.float32)],
        ),
        compiler_params=pltpu.CompilerParams(
            dimension_semantics=("arbitrary",),     # layers are sequential
            vmem_limit_bytes=32 * 1024 * 1024),
    )(cos_full, sin_full, key2,
      packed["Wx"], packed["bx"], packed["Wout"], packed["bout"],
      packed["Wy"], packed["by"], packed["Wxg"], packed["bxg"])

    attn_weights_list = [attn[i] for i in range(NL)]
    if NL > 1:
        next_hidden = hid
    else:
        next_hidden = jnp.zeros((B, Q, 1), jnp.float32)
    return q_out, next_hidden, attn_weights_list


# -----------------------------------------------------------------------------
# Parameters: raw (reference) form and packed (kernel) form
# -----------------------------------------------------------------------------
_W_NAMES = ["Wq", "Wk", "Wv", "Wo", "Wxr", "Wyr", "Wxz", "Wyz", "Wxg", "Wyg"]


def init_params(rng, num_layers, D):
    params_list = []
    for _ in range(num_layers):
        p = {}
        for n in _W_NAMES:
            rng, kw, kb = jax.random.split(rng, 3)
            p[n] = 0.05 * jax.random.normal(kw, (D, D), dtype=jnp.float32)
            p["b" + n[1:]] = 0.01 * jax.random.normal(kb, (D,), dtype=jnp.float32)
        params_list.append(p)
    return params_list


def pack_params(params_list, D):
    """Pack raw per-layer weights for the fused kernel:
       - q/k columns permuted to half-split (even features first) for roll-RoPE
       - 1/sqrt(D) attention scale folded into W_q / b_q
       - x-input projections fused column-wise into Wx = [q'|k|v|x_r|x_z] and
         o-input projections into Wy = [y_r|y_z|y_g]
       - weight matrices stored in bf16 (MXU-native); biases kept in f32."""
    perm = np.concatenate([np.arange(0, D, 2), np.arange(1, D, 2)])
    scale = 1.0 / math.sqrt(D)
    keys = ["Wx", "bx", "Wout", "bout", "Wy", "by", "Wxg", "bxg"]
    packs = {k: [] for k in keys}
    for p in params_list:
        Wq = (p["Wq"] * scale)[:, perm]
        bq = (p["bq"] * scale)[perm]
        Wk = p["Wk"][:, perm]
        bk = p["bk"][perm]
        packs["Wx"].append(jnp.concatenate(
            [Wq, Wk, p["Wv"], p["Wxr"], p["Wxz"]], axis=1))
        packs["bx"].append(jnp.concatenate(
            [bq, bk, p["bv"], p["bxr"], p["bxz"]])[None])
        packs["Wout"].append(p["Wo"])
        packs["bout"].append(p["bo"][None])
        packs["Wy"].append(jnp.concatenate(
            [p["Wyr"], p["Wyz"], p["Wyg"]], axis=1))
        packs["by"].append(jnp.concatenate(
            [p["byr"], p["byz"], p["byg"]])[None])
        packs["Wxg"].append(p["Wxg"])
        packs["bxg"].append(p["bxg"][None])
    out = {}
    for k, v in packs.items():
        arr = jnp.stack(v, axis=0)
        out[k] = arr.astype(jnp.bfloat16) if k.startswith("W") else arr
    return out


# -----------------------------------------------------------------------------
# Pure-JAX reference (mirrors the PyTorch module math, f32 throughout)
# -----------------------------------------------------------------------------
def _rope_ref(x, idx, theta=10000.0):
    D = x.shape[-1]
    H = D // 2
    freqs = 1.0 / (theta ** (jnp.arange(H, dtype=jnp.float32) * 2.0 / D))
    ang = idx.astype(jnp.float32)[..., None] * freqs
    c, s = jnp.cos(ang), jnp.sin(ang)
    xr, xi = x[..., 0::2], x[..., 1::2]
    return jnp.stack([xr * c - xi * s, xr * s + xi * c], axis=-1).reshape(x.shape)


def _block_ref(key, query_length, cut_query, p, key_index):
    B, L, D = key.shape
    if cut_query:
        query = key[:, -query_length:]
        q_index = key_index[:, -query_length:]
        ori_query = key[:, -query_length:]
    else:
        query = key
        q_index = key_index
        ori_query = key
    lin = lambda x, w, b: x @ w + b
    q = _rope_ref(lin(query, p["Wq"], p["bq"]), q_index)
    k = _rope_ref(lin(key, p["Wk"], p["bk"]), key_index)
    v = lin(key, p["Wv"], p["bv"])
    mask = jnp.triu(jnp.ones((L, L), dtype=bool), k=1)
    if cut_query:
        mask = mask[-query_length:]
    scores = jnp.einsum("bqd,bkd->bqk", q / math.sqrt(D), k)
    scores = jnp.where(mask[None], -jnp.inf, scores)
    attn_w = jax.nn.softmax(scores, axis=-1)
    ao = lin(jnp.einsum("bqk,bkd->bqd", attn_w, v), p["Wo"], p["bo"])
    o = jnp.maximum(ao, 0.0) + ori_query
    r = jnp.maximum(lin(ori_query, p["Wxr"], p["bxr"]) + lin(o, p["Wyr"], p["byr"]), 0.0)
    z = jnp.maximum(lin(ori_query, p["Wxz"], p["bxz"]) + lin(o, p["Wyz"], p["byz"]), 0.0)
    h = jnp.tanh(lin(r * ori_query, p["Wxg"], p["bxg"]) + lin(o, p["Wyg"], p["byg"]))
    return (1.0 - z) * ori_query + z * h, attn_w


def episode_multihead_attention_ref(key, query_length, params_list, key_index):
    B, L, D = key.shape
    NL = len(params_list)
    hid_list, attn_list = [], []
    _k = key
    for p in params_list[:-1]:
        out, w = _block_ref(_k, query_length, False, p, key_index)
        _k = out
        hid_list.append(out[:, -query_length:])
        attn_list.append(w[:, -query_length:])
    out, w = _block_ref(_k, query_length, True, params_list[-1], key_index)
    attn_list.append(w)
    if NL > 1:
        return out, jnp.concatenate(hid_list, axis=-1), attn_list
    return out, jnp.zeros((B, query_length, 1), jnp.float32), attn_list


# -----------------------------------------------------------------------------
if __name__ == "__main__":
    B, L, D = 2, 8, 128          # batch, key_length, embed_dim (lane-aligned)
    query_length = 2
    num_layers = 2               # num_heads is unused by the module's math

    root = jax.random.PRNGKey(0)
    k_inp, k_par = jax.random.split(root)
    key_arr = jax.random.normal(k_inp, (B, L, D), dtype=jnp.float32)
    key_index = jnp.broadcast_to(jnp.arange(L, dtype=jnp.int32), (B, L))

    params_list = init_params(k_par, num_layers, D)
    packed = pack_params(params_list, D)

    q_out, next_h, attn_list = jax.block_until_ready(
        episode_multihead_attention_pallas(key_arr, query_length, packed, key_index))
    q_ref, next_h_ref, attn_ref = jax.block_until_ready(
        episode_multihead_attention_ref(key_arr, query_length, params_list, key_index))

    # Kernel uses bf16 weights / MXU operands (f32 accumulation) vs an all-f32
    # reference -> slightly looser tolerance than a pure-f32 comparison.
    tol = dict(rtol=5e-2, atol=5e-2)
    np.testing.assert_allclose(np.asarray(q_out), np.asarray(q_ref), **tol)
    np.testing.assert_allclose(np.asarray(next_h), np.asarray(next_h_ref), **tol)
    for a, b in zip(attn_list, attn_ref):
        np.testing.assert_allclose(np.asarray(a), np.asarray(b), **tol)

    assert q_out.shape == (B, query_length, D)
    assert next_h.shape == (B, query_length, D * (num_layers - 1))
    for w in attn_list:
        assert w.shape == (B, query_length, L)

    print("KERNEL_OK")
</pallas_src>

<mosaic_0001>
module attributes {stable_mosaic.version = 11 : i64} {
  func.func @_emha_kernel(%arg0: i32, %arg1: memref<16x128xf32, #tpu.memory_space<vmem>>, %arg2: memref<16x128xf32, #tpu.memory_space<vmem>>, %arg3: memref<16x128xf32, #tpu.memory_space<any>>, %arg4: memref<1x128x640xbf16, #tpu.memory_space<vmem>>, %arg5: memref<1x1x640xf32, #tpu.memory_space<vmem>>, %arg6: memref<1x128x128xbf16, #tpu.memory_space<vmem>>, %arg7: memref<1x1x128xf32, #tpu.memory_space<vmem>>, %arg8: memref<1x128x384xbf16, #tpu.memory_space<vmem>>, %arg9: memref<1x1x384xf32, #tpu.memory_space<vmem>>, %arg10: memref<1x128x128xbf16, #tpu.memory_space<vmem>>, %arg11: memref<1x1x128xf32, #tpu.memory_space<vmem>>, %arg12: memref<2x2x128xf32, #tpu.memory_space<vmem>>, %arg13: memref<2x2x128xf32, #tpu.memory_space<vmem>>, %arg14: memref<1x2x2x8xf32, #tpu.memory_space<vmem>>, %arg15: memref<16x128xf32, #tpu.memory_space<vmem>>) attributes {dimension_semantics = [#tpu.dimension_semantics<arbitrary>], iteration_bounds = array<i64: 2>, scalar_prefetch = 0 : i64, scratch_operands = 1 : i64, tpu.core_type = #tpu.core_type<tc>, window_params = [{pipeline_mode = #tpu.pipeline_mode<synchronous>, transform_indices = @transform_0, window_bounds = array<i64: 16, 128>}, {pipeline_mode = #tpu.pipeline_mode<synchronous>, transform_indices = @transform_1, window_bounds = array<i64: 16, 128>}, {}, {transform_indices = @transform_3, window_bounds = array<i64: 1, 128, 640>}, {transform_indices = @transform_4, window_bounds = array<i64: 1, 1, 640>}, {transform_indices = @transform_5, window_bounds = array<i64: 1, 128, 128>}, {transform_indices = @transform_6, window_bounds = array<i64: 1, 1, 128>}, {transform_indices = @transform_7, window_bounds = array<i64: 1, 128, 384>}, {transform_indices = @transform_8, window_bounds = array<i64: 1, 1, 384>}, {transform_indices = @transform_9, window_bounds = array<i64: 1, 128, 128>}, {transform_indices = @transform_10, window_bounds = array<i64: 1, 1, 128>}, {pipeline_mode = #tpu.pipeline_mode<synchronous>, transform_indices = @transform_11, window_bounds = array<i64: 2, 2, 128>}, {transform_indices = @transform_12, window_bounds = array<i64: 2, 2, 128>}, {transform_indices = @transform_13, window_bounds = array<i64: 1, 2, 2, 8>}]} {
    %c0_i32 = arith.constant 0 : i32
    %0 = arith.cmpi eq, %arg0, %c0_i32 : i32
    %1 = arith.extui %0 : i1 to i32
    %c0_i32_0 = arith.constant 0 : i32
    %2 = arith.cmpi ne, %1, %c0_i32_0 : i32
    scf.if %2 {
      "tpu.region"() ({
        %38 = tpu.sem_alloc : memref<!tpu.dma_semaphore, #tpu.memory_space<semaphore_mem>>
        tpu.enqueue_dma source(%arg3 : memref<16x128xf32, #tpu.memory_space<any>>) target(%arg15 : memref<16x128xf32, #tpu.memory_space<vmem>>) target_semaphore(%38 : memref<!tpu.dma_semaphore, #tpu.memory_space<semaphore_mem>>)
        tpu.wait_dma2 semaphore(%38 : memref<!tpu.dma_semaphore, #tpu.memory_space<semaphore_mem>>) src(%arg3 : memref<16x128xf32, #tpu.memory_space<any>>) dst(%arg15 : memref<16x128xf32, #tpu.memory_space<vmem>>)
        tpu.yield
      }) : () -> ()
    } else {
    }
    %c0 = arith.constant 0 : index
    %c0_1 = arith.constant 0 : index
    %3 = vector.load %arg15[%c0, %c0_1] : memref<16x128xf32, #tpu.memory_space<vmem>>, vector<16x128xf32>
    %c0_2 = arith.constant 0 : index
    %c0_3 = arith.constant 0 : index
    %4 = vector.load %arg1[%c0_2, %c0_3] : memref<16x128xf32, #tpu.memory_space<vmem>>, vector<16x128xf32>
    %c0_4 = arith.constant 0 : index
    %c0_5 = arith.constant 0 : index
    %5 = vector.load %arg2[%c0_4, %c0_5] : memref<16x128xf32, #tpu.memory_space<vmem>>, vector<16x128xf32>
    %6 = arith.truncf %3 : vector<16x128xf32> to vector<16x128xbf16>
    %c0_6 = arith.constant 0 : index
    %c0_7 = arith.constant 0 : index
    %c0_8 = arith.constant 0 : index
    %7 = vector.load %arg4[%c0_6, %c0_7, %c0_8] : memref<1x128x640xbf16, #tpu.memory_space<vmem>>, vector<1x128x640xbf16>
    %8 = vector.shape_cast %7 : vector<1x128x640xbf16> to vector<128x640xbf16>
    %cst = arith.constant dense<0.000000e+00> : vector<16x640xf32>
    %9 = tpu.matmul %6, %8, %cst {dimension_numbers = #tpu.dot_dimension_numbers<[1], [0], [0], [1], [0, 0, 1, 1], [], []>} : vector<16x128xbf16>, vector<128x640xbf16>, vector<16x640xf32> -> vector<16x640xf32>
    %c0_9 = arith.constant 0 : index
    %c0_10 = arith.constant 0 : index
    %c0_11 = arith.constant 0 : index
    %10 = vector.load %arg5[%c0_9, %c0_10, %c0_11] : memref<1x1x640xf32, #tpu.memory_space<vmem>>, vector<1x1x640xf32>
    %11 = vector.shape_cast %10 : vector<1x1x640xf32> to vector<1x640xf32>
    %12 = vector.broadcast %11 : vector<1x640xf32> to vector<16x640xf32>
    %13 = arith.addf %9, %12 : vector<16x640xf32>
    %14 = vector.extract_strided_slice %13 {offsets = [0, 0], sizes = [16, 128], strides = [1, 1]} : vector<16x640xf32> to vector<16x128xf32>
    %15 = vector.extract_strided_slice %13 {offsets = [0, 128], sizes = [16, 128], strides = [1, 1]} : vector<16x640xf32> to vector<16x128xf32>
    %16 = vector.extract_strided_slice %13 {offsets = [0, 256], sizes = [16, 128], strides = [1, 1]} : vector<16x640xf32> to vector<16x128xf32>
    %17 = vector.extract_strided_slice %13 {offsets = [0, 384], sizes = [16, 128], strides = [1, 1]} : vector<16x640xf32> to vector<16x128xf32>
    %18 = vector.extract_strided_slice %13 {offsets = [0, 512], sizes = [16, 128], strides = [1, 1]} : vector<16x640xf32> to vector<16x128xf32>
    %19 = arith.mulf %14, %4 : vector<16x128xf32>
    %c64_i32 = arith.constant 64 : i32
    %20 = tpu.dynamic_rotate %14 by %c64_i32 dim 1 : vector<16x128xf32>, i32 -> vector<16x128xf32>
    %21 = arith.mulf %20, %5 : vector<16x128xf32>
    %22 = arith.addf %19, %21 : vector<16x128xf32>
    %23 = vector.shape_cast %22 : vector<16x128xf32> to vector<2x8x128xf32>
    %24 = arith.mulf %15, %4 : vector<16x128xf32>
    %c64_i32_12 = arith.constant 64 : i32
    %25 = tpu.dynamic_rotate %15 by %c64_i32_12 dim 1 : vector<16x128xf32>, i32 -> vector<16x128xf32>
    %26 = arith.mulf %25, %5 : vector<16x128xf32>
    %27 = arith.addf %24, %26 : vector<16x128xf32>
    %28 = vector.shape_cast %27 : vector<16x128xf32> to vector<2x8x128xf32>
    %29 = arith.truncf %28 : vector<2x8x128xf32> to vector<2x8x128xbf16>
    %30 = vector.shape_cast %16 : vector<16x128xf32> to vector<2x8x128xf32>
    %31 = arith.truncf %30 : vector<2x8x128xf32> to vector<2x8x128xbf16>
    %c1_i32 = arith.constant 1 : i32
    %32 = arith.cmpi slt, %arg0, %c1_i32 : i32
    %33 = arith.extui %32 : i1 to i32
    %c0_i32_13 = arith.constant 0 : i32
    %34 = arith.cmpi ne, %33, %c0_i32_13 : i32
    scf.if %34 {
      %38 = arith.truncf %23 : vector<2x8x128xf32> to vector<2x8x128xbf16>
      "tpu.trace_start"() <{level = 10 : i32, message = "bqd,bkd->bqk"}> : () -> ()
      %cst_16 = arith.constant dense<0.000000e+00> : vector<2x8x8xf32>
      %39 = tpu.matmul %38, %29, %cst_16 {dimension_numbers = #tpu.dot_dimension_numbers<[2], [2], [1], [1], [0, 0, 0, 1, 1, 1], [0], [0]>} : vector<2x8x128xbf16>, vector<2x8x128xbf16>, vector<2x8x8xf32> -> vector<2x8x8xf32>
      "tpu.trace_stop"() : () -> ()
      %40 = tpu.iota {dimensions = array<i32: 0>} : vector<8x8xi32>
      %c0_i32_17 = arith.constant 0 : i32
      %41 = vector.broadcast %c0_i32_17 : i32 to vector<8x8xi32>
      %42 = arith.addi %40, %41 : vector<8x8xi32>
      %43 = tpu.iota {dimensions = array<i32: 1>} : vector<8x8xi32>
      %44 = arith.cmpi sgt, %43, %42 : vector<8x8xi32>
      %cst_18 = arith.constant -1.000000e+30 : f32
      %cst_19 = arith.constant 0.000000e+00 : f32
      %45 = vector.broadcast %cst_18 : f32 to vector<8x8xf32>
      %46 = vector.broadcast %cst_19 : f32 to vector<8x8xf32>
      %47 = arith.select %44, %45, %46 : vector<8x8xi1>, vector<8x8xf32>
      %48 = vector.shape_cast %47 : vector<8x8xf32> to vector<1x8x8xf32>
      %49 = vector.broadcast %48 : vector<1x8x8xf32> to vector<2x8x8xf32>
      %50 = arith.addf %39, %49 : vector<2x8x8xf32>
      %cst_20 = arith.constant dense<0xFF800000> : vector<2x8xf32>
      %51 = vector.multi_reduction <maximumf>, %50, %cst_20 [2] : vector<2x8x8xf32> to vector<2x8xf32>
      %52 = vector.shape_cast %51 : vector<2x8xf32> to vector<2x8x1xf32>
      %53 = vector.broadcast %52 : vector<2x8x1xf32> to vector<2x8x8xf32>
      %54 = arith.subf %50, %53 : vector<2x8x8xf32>
      %55 = math.exp %54 : vector<2x8x8xf32>
      %cst_21 = arith.constant dense<0.000000e+00> : vector<2x8xf32>
      %56 = vector.multi_reduction <add>, %55, %cst_21 [2] : vector<2x8x8xf32> to vector<2x8xf32>
      %57 = vector.shape_cast %56 : vector<2x8xf32> to vector<2x8x1xf32>
      %58 = tpu.reciprocal %57 {approx = true} : vector<2x8x1xf32> -> vector<2x8x1xf32>
      %59 = vector.broadcast %58 : vector<2x8x1xf32> to vector<2x8x8xf32>
      %60 = arith.mulf %55, %59 : vector<2x8x8xf32>
      %61 = arith.truncf %60 : vector<2x8x8xf32> to vector<2x8x8xbf16>
      "tpu.trace_start"() <{level = 10 : i32, message = "bqk,bkd->bqd"}> : () -> ()
      %cst_22 = arith.constant dense<0.000000e+00> : vector<2x8x128xf32>
      %62 = tpu.matmul %61, %31, %cst_22 {dimension_numbers = #tpu.dot_dimension_numbers<[2], [1], [1], [2], [0, 0, 0, 1, 1, 2], [0], [0]>} : vector<2x8x8xbf16>, vector<2x8x128xbf16>, vector<2x8x128xf32> -> vector<2x8x128xf32>
      "tpu.trace_stop"() : () -> ()
      %63 = vector.shape_cast %62 : vector<2x8x128xf32> to vector<16x128xf32>
      %64 = arith.truncf %63 : vector<16x128xf32> to vector<16x128xbf16>
      %c0_23 = arith.constant 0 : index
      %c0_24 = arith.constant 0 : index
      %c0_25 = arith.constant 0 : index
      %65 = vector.load %arg6[%c0_23, %c0_24, %c0_25] : memref<1x128x128xbf16, #tpu.memory_space<vmem>>, vector<1x128x128xbf16>
      %66 = vector.shape_cast %65 : vector<1x128x128xbf16> to vector<128x128xbf16>
      %cst_26 = arith.constant dense<0.000000e+00> : vector<16x128xf32>
      %67 = tpu.matmul %64, %66, %cst_26 {dimension_numbers = #tpu.dot_dimension_numbers<[1], [0], [0], [1], [0, 0, 1, 1], [], []>} : vector<16x128xbf16>, vector<128x128xbf16>, vector<16x128xf32> -> vector<16x128xf32>
      %c0_27 = arith.constant 0 : index
      %c0_28 = arith.constant 0 : index
      %c0_29 = arith.constant 0 : index
      %68 = vector.load %arg7[%c0_27, %c0_28, %c0_29] : memref<1x1x128xf32, #tpu.memory_space<vmem>>, vector<1x1x128xf32>
      %69 = vector.shape_cast %68 : vector<1x1x128xf32> to vector<1x128xf32>
      %70 = vector.broadcast %69 : vector<1x128xf32> to vector<16x128xf32>
      %71 = arith.addf %67, %70 : vector<16x128xf32>
      %cst_30 = arith.constant 0.000000e+00 : f32
      %72 = vector.broadcast %cst_30 : f32 to vector<16x128xf32>
      %73 = arith.maximumf %71, %72 : vector<16x128xf32>
      %74 = arith.addf %73, %3 : vector<16x128xf32>
      %75 = arith.truncf %74 : vector<16x128xf32> to vector<16x128xbf16>
      %c0_31 = arith.constant 0 : index
      %c0_32 = arith.constant 0 : index
      %c0_33 = arith.constant 0 : index
      %76 = vector.load %arg8[%c0_31, %c0_32, %c0_33] : memref<1x128x384xbf16, #tpu.memory_space<vmem>>, vector<1x128x384xbf16>
      %77 = vector.shape_cast %76 : vector<1x128x384xbf16> to vector<128x384xbf16>
      %cst_34 = arith.constant dense<0.000000e+00> : vector<16x384xf32>
      %78 = tpu.matmul %75, %77, %cst_34 {dimension_numbers = #tpu.dot_dimension_numbers<[1], [0], [0], [1], [0, 0, 1, 1], [], []>} : vector<16x128xbf16>, vector<128x384xbf16>, vector<16x384xf32> -> vector<16x384xf32>
      %c0_35 = arith.constant 0 : index
      %c0_36 = arith.constant 0 : index
      %c0_37 = arith.constant 0 : index
      %79 = vector.load %arg9[%c0_35, %c0_36, %c0_37] : memref<1x1x384xf32, #tpu.memory_space<vmem>>, vector<1x1x384xf32>
      %80 = vector.shape_cast %79 : vector<1x1x384xf32> to vector<1x384xf32>
      %81 = vector.broadcast %80 : vector<1x384xf32> to vector<16x384xf32>
      %82 = arith.addf %78, %81 : vector<16x384xf32>
      %83 = vector.extract_strided_slice %82 {offsets = [0, 0], sizes = [16, 128], strides = [1, 1]} : vector<16x384xf32> to vector<16x128xf32>
      %84 = arith.addf %17, %83 : vector<16x128xf32>
      %cst_38 = arith.constant 0.000000e+00 : f32
      %85 = vector.broadcast %cst_38 : f32 to vector<16x128xf32>
      %86 = arith.maximumf %84, %85 : vector<16x128xf32>
      %87 = vector.extract_strided_slice %82 {offsets = [0, 128], sizes = [16, 128], strides = [1, 1]} : vector<16x384xf32> to vector<16x128xf32>
      %88 = arith.addf %18, %87 : vector<16x128xf32>
      %cst_39 = arith.constant 0.000000e+00 : f32
      %89 = vector.broadcast %cst_39 : f32 to vector<16x128xf32>
      %90 = arith.maximumf %88, %89 : vector<16x128xf32>
      %91 = arith.mulf %86, %3 : vector<16x128xf32>
      %92 = arith.truncf %91 : vector<16x128xf32> to vector<16x128xbf16>
      %c0_40 = arith.constant 0 : index
      %c0_41 = arith.constant 0 : index
      %c0_42 = arith.constant 0 : index
      %93 = vector.load %arg10[%c0_40, %c0_41, %c0_42] : memref<1x128x128xbf16, #tpu.memory_space<vmem>>, vector<1x128x128xbf16>
      %94 = vector.shape_cast %93 : vector<1x128x128xbf16> to vector<128x128xbf16>
      %cst_43 = arith.constant dense<0.000000e+00> : vector<16x128xf32>
      %95 = tpu.matmul %92, %94, %cst_43 {dimension_numbers = #tpu.dot_dimension_numbers<[1], [0], [0], [1], [0, 0, 1, 1], [], []>} : vector<16x128xbf16>, vector<128x128xbf16>, vector<16x128xf32> -> vector<16x128xf32>
      %c0_44 = arith.constant 0 : index
      %c0_45 = arith.constant 0 : index
      %c0_46 = arith.constant 0 : index
      %96 = vector.load %arg11[%c0_44, %c0_45, %c0_46] : memref<1x1x128xf32, #tpu.memory_space<vmem>>, vector<1x1x128xf32>
      %97 = vector.shape_cast %96 : vector<1x1x128xf32> to vector<1x128xf32>
      %98 = vector.broadcast %97 : vector<1x128xf32> to vector<16x128xf32>
      %99 = arith.addf %95, %98 : vector<16x128xf32>
      %100 = vector.extract_strided_slice %82 {offsets = [0, 256], sizes = [16, 128], strides = [1, 1]} : vector<16x384xf32> to vector<16x128xf32>
      %101 = arith.addf %99, %100 : vector<16x128xf32>
      %102 = math.tanh %101 : vector<16x128xf32>
      %cst_47 = arith.constant 1.000000e+00 : f32
      %103 = vector.broadcast %cst_47 : f32 to vector<16x128xf32>
      %104 = arith.subf %103, %90 : vector<16x128xf32>
      %105 = arith.mulf %104, %3 : vector<16x128xf32>
      %106 = arith.mulf %90, %102 : vector<16x128xf32>
      %107 = arith.addf %105, %106 : vector<16x128xf32>
      %108 = vector.shape_cast %107 : vector<16x128xf32> to vector<2x8x128xf32>
      %109 = vector.shape_cast %108 : vector<2x8x128xf32> to vector<16x128xf32>
      %c0_48 = arith.constant 0 : index
      %c0_49 = arith.constant 0 : index
      %110 = vector.load %arg15[%c0_48, %c0_49] : memref<16x128xf32, #tpu.memory_space<vmem>>, vector<16x128xf32>
      tpu.vector_store %arg15[%c0_48, %c0_49], %109 {strides = array<i32>} : memref<16x128xf32, #tpu.memory_space<vmem>>, vector<16x128xf32>,
      %111 = vector.extract_strided_slice %108 {offsets = [0, 6, 0], sizes = [2, 2, 128], strides = [1, 1, 1]} : vector<2x8x128xf32> to vector<2x2x128xf32>
      %c0_50 = arith.constant 0 : index
      %c0_51 = arith.constant 0 : index
      %c0_52 = arith.constant 0 : index
      %112 = vector.load %arg13[%c0_50, %c0_51, %c0_52] : memref<2x2x128xf32, #tpu.memory_space<vmem>>, vector<2x2x128xf32>
      tpu.vector_store %arg13[%c0_50, %c0_51, %c0_52], %111 {strides = array<i32>} : memref<2x2x128xf32, #tpu.memory_space<vmem>>, vector<2x2x128xf32>,
      %113 = vector.extract_strided_slice %60 {offsets = [0, 6, 0], sizes = [2, 2, 8], strides = [1, 1, 1]} : vector<2x8x8xf32> to vector<2x2x8xf32>
      %c0_53 = arith.constant 0 : index
      %c0_54 = arith.constant 0 : index
      %c0_55 = arith.constant 0 : index
      %c0_56 = arith.constant 0 : index
      %114 = vector.load %arg14[%c0_53, %c0_54, %c0_55, %c0_56] : memref<1x2x2x8xf32, #tpu.memory_space<vmem>>, vector<1x2x2x8xf32>
      %115 = vector.shape_cast %114 : vector<1x2x2x8xf32> to vector<2x2x8xf32>
      %116 = vector.shape_cast %113 : vector<2x2x8xf32> to vector<1x2x2x8xf32>
      tpu.vector_store %arg14[%c0_53, %c0_54, %c0_55, %c0_56], %116 {strides = array<i32>} : memref<1x2x2x8xf32, #tpu.memory_space<vmem>>, vector<1x2x2x8xf32>,
    } else {
    }
    %c1_i32_14 = arith.constant 1 : i32
    %35 = arith.cmpi eq, %arg0, %c1_i32_14 : i32
    %36 = arith.extui %35 : i1 to i32
    %c0_i32_15 = arith.constant 0 : i32
    %37 = arith.cmpi ne, %36, %c0_i32_15 : i32
    scf.if %37 {
      %38 = vector.extract_strided_slice %23 {offsets = [0, 6, 0], sizes = [2, 2, 128], strides = [1, 1, 1]} : vector<2x8x128xf32> to vector<2x2x128xf32>
      %39 = vector.shape_cast %3 : vector<16x128xf32> to vector<2x8x128xf32>
      %40 = vector.extract_strided_slice %39 {offsets = [0, 6, 0], sizes = [2, 2, 128], strides = [1, 1, 1]} : vector<2x8x128xf32> to vector<2x2x128xf32>
      %41 = vector.shape_cast %40 : vector<2x2x128xf32> to vector<4x128xf32>
      %42 = vector.shape_cast %17 : vector<16x128xf32> to vector<2x8x128xf32>
      %43 = vector.extract_strided_slice %42 {offsets = [0, 6, 0], sizes = [2, 2, 128], strides = [1, 1, 1]} : vector<2x8x128xf32> to vector<2x2x128xf32>
      %44 = vector.shape_cast %43 : vector<2x2x128xf32> to vector<4x128xf32>
      %45 = vector.shape_cast %18 : vector<16x128xf32> to vector<2x8x128xf32>
      %46 = vector.extract_strided_slice %45 {offsets = [0, 6, 0], sizes = [2, 2, 128], strides = [1, 1, 1]} : vector<2x8x128xf32> to vector<2x2x128xf32>
      %47 = vector.shape_cast %46 : vector<2x2x128xf32> to vector<4x128xf32>
      %48 = arith.truncf %38 : vector<2x2x128xf32> to vector<2x2x128xbf16>
      "tpu.trace_start"() <{level = 10 : i32, message = "bqd,bkd->bqk"}> : () -> ()
      %cst_16 = arith.constant dense<0.000000e+00> : vector<2x2x8xf32>
      %49 = tpu.matmul %48, %29, %cst_16 {dimension_numbers = #tpu.dot_dimension_numbers<[2], [2], [1], [1], [0, 0, 0, 1, 1, 1], [0], [0]>} : vector<2x2x128xbf16>, vector<2x8x128xbf16>, vector<2x2x8xf32> -> vector<2x2x8xf32>
      "tpu.trace_stop"() : () -> ()
      %50 = tpu.iota {dimensions = array<i32: 0>} : vector<2x8xi32>
      %c6_i32 = arith.constant 6 : i32
      %51 = vector.broadcast %c6_i32 : i32 to vector<2x8xi32>
      %52 = arith.addi %50, %51 : vector<2x8xi32>
      %53 = tpu.iota {dimensions = array<i32: 1>} : vector<2x8xi32>
      %54 = arith.cmpi sgt, %53, %52 : vector<2x8xi32>
      %cst_17 = arith.constant -1.000000e+30 : f32
      %cst_18 = arith.constant 0.000000e+00 : f32
      %55 = vector.broadcast %cst_17 : f32 to vector<2x8xf32>
      %56 = vector.broadcast %cst_18 : f32 to vector<2x8xf32>
      %57 = arith.select %54, %55, %56 : vector<2x8xi1>, vector<2x8xf32>
      %58 = vector.shape_cast %57 : vector<2x8xf32> to vector<1x2x8xf32>
      %59 = vector.broadcast %58 : vector<1x2x8xf32> to vector<2x2x8xf32>
      %60 = arith.addf %49, %59 : vector<2x2x8xf32>
      %cst_19 = arith.constant dense<0xFF800000> : vector<2x2xf32>
      %61 = vector.multi_reduction <maximumf>, %60, %cst_19 [2] : vector<2x2x8xf32> to vector<2x2xf32>
      %62 = vector.shape_cast %61 : vector<2x2xf32> to vector<2x2x1xf32>
      %63 = vector.broadcast %62 : vector<2x2x1xf32> to vector<2x2x8xf32>
      %64 = arith.subf %60, %63 : vector<2x2x8xf32>
      %65 = math.exp %64 : vector<2x2x8xf32>
      %cst_20 = arith.constant dense<0.000000e+00> : vector<2x2xf32>
      %66 = vector.multi_reduction <add>, %65, %cst_20 [2] : vector<2x2x8xf32> to vector<2x2xf32>
      %67 = vector.shape_cast %66 : vector<2x2xf32> to vector<2x2x1xf32>
      %68 = tpu.reciprocal %67 {approx = true} : vector<2x2x1xf32> -> vector<2x2x1xf32>
      %69 = vector.broadcast %68 : vector<2x2x1xf32> to vector<2x2x8xf32>
      %70 = arith.mulf %65, %69 : vector<2x2x8xf32>
      %71 = arith.truncf %70 : vector<2x2x8xf32> to vector<2x2x8xbf16>
      "tpu.trace_start"() <{level = 10 : i32, message = "bqk,bkd->bqd"}> : () -> ()
      %cst_21 = arith.constant dense<0.000000e+00> : vector<2x2x128xf32>
      %72 = tpu.matmul %71, %31, %cst_21 {dimension_numbers = #tpu.dot_dimension_numbers<[2], [1], [1], [2], [0, 0, 0, 1, 1, 2], [0], [0]>} : vector<2x2x8xbf16>, vector<2x8x128xbf16>, vector<2x2x128xf32> -> vector<2x2x128xf32>
      "tpu.trace_stop"() : () -> ()
      %73 = vector.shape_cast %72 : vector<2x2x128xf32> to vector<4x128xf32>
      %74 = arith.truncf %73 : vector<4x128xf32> to vector<4x128xbf16>
      %c0_22 = arith.constant 0 : index
      %c0_23 = arith.constant 0 : index
      %c0_24 = arith.constant 0 : index
      %75 = vector.load %arg6[%c0_22, %c0_23, %c0_24] : memref<1x128x128xbf16, #tpu.memory_space<vmem>>, vector<1x128x128xbf16>
      %76 = vector.shape_cast %75 : vector<1x128x128xbf16> to vector<128x128xbf16>
      %cst_25 = arith.constant dense<0.000000e+00> : vector<4x128xf32>
      %77 = tpu.matmul %74, %76, %cst_25 {dimension_numbers = #tpu.dot_dimension_numbers<[1], [0], [0], [1], [0, 0, 1, 1], [], []>} : vector<4x128xbf16>, vector<128x128xbf16>, vector<4x128xf32> -> vector<4x128xf32>
      %c0_26 = arith.constant 0 : index
      %c0_27 = arith.constant 0 : index
      %c0_28 = arith.constant 0 : index
      %78 = vector.load %arg7[%c0_26, %c0_27, %c0_28] : memref<1x1x128xf32, #tpu.memory_space<vmem>>, vector<1x1x128xf32>
      %79 = vector.shape_cast %78 : vector<1x1x128xf32> to vector<1x128xf32>
      %80 = vector.broadcast %79 : vector<1x128xf32> to vector<4x128xf32>
      %81 = arith.addf %77, %80 : vector<4x128xf32>
      %cst_29 = arith.constant 0.000000e+00 : f32
      %82 = vector.broadcast %cst_29 : f32 to vector<4x128xf32>
      %83 = arith.maximumf %81, %82 : vector<4x128xf32>
      %84 = arith.addf %83, %41 : vector<4x128xf32>
      %85 = arith.truncf %84 : vector<4x128xf32> to vector<4x128xbf16>
      %c0_30 = arith.constant 0 : index
      %c0_31 = arith.constant 0 : index
      %c0_32 = arith.constant 0 : index
      %86 = vector.load %arg8[%c0_30, %c0_31, %c0_32] : memref<1x128x384xbf16, #tpu.memory_space<vmem>>, vector<1x128x384xbf16>
      %87 = vector.shape_cast %86 : vector<1x128x384xbf16> to vector<128x384xbf16>
      %cst_33 = arith.constant dense<0.000000e+00> : vector<4x384xf32>
      %88 = tpu.matmul %85, %87, %cst_33 {dimension_numbers = #tpu.dot_dimension_numbers<[1], [0], [0], [1], [0, 0, 1, 1], [], []>} : vector<4x128xbf16>, vector<128x384xbf16>, vector<4x384xf32> -> vector<4x384xf32>
      %c0_34 = arith.constant 0 : index
      %c0_35 = arith.constant 0 : index
      %c0_36 = arith.constant 0 : index
      %89 = vector.load %arg9[%c0_34, %c0_35, %c0_36] : memref<1x1x384xf32, #tpu.memory_space<vmem>>, vector<1x1x384xf32>
      %90 = vector.shape_cast %89 : vector<1x1x384xf32> to vector<1x384xf32>
      %91 = vector.broadcast %90 : vector<1x384xf32> to vector<4x384xf32>
      %92 = arith.addf %88, %91 : vector<4x384xf32>
      %93 = vector.extract_strided_slice %92 {offsets = [0, 0], sizes = [4, 128], strides = [1, 1]} : vector<4x384xf32> to vector<4x128xf32>
      %94 = arith.addf %44, %93 : vector<4x128xf32>
      %cst_37 = arith.constant 0.000000e+00 : f32
      %95 = vector.broadcast %cst_37 : f32 to vector<4x128xf32>
      %96 = arith.maximumf %94, %95 : vector<4x128xf32>
      %97 = vector.extract_strided_slice %92 {offsets = [0, 128], sizes = [4, 128], strides = [1, 1]} : vector<4x384xf32> to vector<4x128xf32>
      %98 = arith.addf %47, %97 : vector<4x128xf32>
      %cst_38 = arith.constant 0.000000e+00 : f32
      %99 = vector.broadcast %cst_38 : f32 to vector<4x128xf32>
      %100 = arith.maximumf %98, %99 : vector<4x128xf32>
      %101 = arith.mulf %96, %41 : vector<4x128xf32>
      %102 = arith.truncf %101 : vector<4x128xf32> to vector<4x128xbf16>
      %c0_39 = arith.constant 0 : index
      %c0_40 = arith.constant 0 : index
      %c0_41 = arith.constant 0 : index
      %103 = vector.load %arg10[%c0_39, %c0_40, %c0_41] : memref<1x128x128xbf16, #tpu.memory_space<vmem>>, vector<1x128x128xbf16>
      %104 = vector.shape_cast %103 : vector<1x128x128xbf16> to vector<128x128xbf16>
      %cst_42 = arith.constant dense<0.000000e+00> : vector<4x128xf32>
      %105 = tpu.matmul %102, %104, %cst_42 {dimension_numbers = #tpu.dot_dimension_numbers<[1], [0], [0], [1], [0, 0, 1, 1], [], []>} : vector<4x128xbf16>, vector<128x128xbf16>, vector<4x128xf32> -> vector<4x128xf32>
      %c0_43 = arith.constant 0 : index
      %c0_44 = arith.constant 0 : index
      %c0_45 = arith.constant 0 : index
      %106 = vector.load %arg11[%c0_43, %c0_44, %c0_45] : memref<1x1x128xf32, #tpu.memory_space<vmem>>, vector<1x1x128xf32>
      %107 = vector.shape_cast %106 : vector<1x1x128xf32> to vector<1x128xf32>
      %108 = vector.broadcast %107 : vector<1x128xf32> to vector<4x128xf32>
      %109 = arith.addf %105, %108 : vector<4x128xf32>
      %110 = vector.extract_strided_slice %92 {offsets = [0, 256], sizes = [4, 128], strides = [1, 1]} : vector<4x384xf32> to vector<4x128xf32>
      %111 = arith.addf %109, %110 : vector<4x128xf32>
      %112 = math.tanh %111 : vector<4x128xf32>
      %cst_46 = arith.constant 1.000000e+00 : f32
      %113 = vector.broadcast %cst_46 : f32 to vector<4x128xf32>
      %114 = arith.subf %113, %100 : vector<4x128xf32>
      %115 = arith.mulf %114, %41 : vector<4x128xf32>
      %116 = arith.mulf %100, %112 : vector<4x128xf32>
      %117 = arith.addf %115, %116 : vector<4x128xf32>
      %118 = vector.shape_cast %117 : vector<4x128xf32> to vector<2x2x128xf32>
      %c0_47 = arith.constant 0 : index
      %c0_48 = arith.constant 0 : index
      %c0_49 = arith.constant 0 : index
      %119 = vector.load %arg12[%c0_47, %c0_48, %c0_49] : memref<2x2x128xf32, #tpu.memory_space<vmem>>, vector<2x2x128xf32>
      tpu.vector_store %arg12[%c0_47, %c0_48, %c0_49], %118 {strides = array<i32>} : memref<2x2x128xf32, #tpu.memory_space<vmem>>, vector<2x2x128xf32>,
      %c0_50 = arith.constant 0 : index
      %c0_51 = arith.constant 0 : index
      %c0_52 = arith.constant 0 : index
      %c0_53 = arith.constant 0 : index
      %120 = vector.load %arg14[%c0_50, %c0_51, %c0_52, %c0_53] : memref<1x2x2x8xf32, #tpu.memory_space<vmem>>, vector<1x2x2x8xf32>
      %121 = vector.shape_cast %120 : vector<1x2x2x8xf32> to vector<2x2x8xf32>
      %122 = vector.shape_cast %70 : vector<2x2x8xf32> to vector<1x2x2x8xf32>
      tpu.vector_store %arg14[%c0_50, %c0_51, %c0_52, %c0_53], %122 {strides = array<i32>} : memref<1x2x2x8xf32, #tpu.memory_space<vmem>>, vector<1x2x2x8xf32>,
    } else {
    }
    return
  }
  func.func @transform_0(%arg0: i32) -> (i32, i32) {
    %c0_i32 = arith.constant 0 : i32
    %c0_i32_0 = arith.constant 0 : i32
    %c0_i32_1 = arith.constant 0 : i32
    return %c0_i32, %c0_i32_0 : i32, i32
  }
  func.func @transform_1(%arg0: i32) -> (i32, i32) {
    %c0_i32 = arith.constant 0 : i32
    %c0_i32_0 = arith.constant 0 : i32
    %c0_i32_1 = arith.constant 0 : i32
    return %c0_i32, %c0_i32_0 : i32, i32
  }
  func.func @transform_3(%arg0: i32) -> (i32, i32, i32) {
    %c0_i32 = arith.constant 0 : i32
    %c0_i32_0 = arith.constant 0 : i32
    %c0_i32_1 = arith.constant 0 : i32
    return %arg0, %c0_i32, %c0_i32_0 : i32, i32, i32
  }
  func.func @transform_4(%arg0: i32) -> (i32, i32, i32) {
    %c0_i32 = arith.constant 0 : i32
    %c0_i32_0 = arith.constant 0 : i32
    %c0_i32_1 = arith.constant 0 : i32
    return %arg0, %c0_i32, %c0_i32_0 : i32, i32, i32
  }
  func.func @transform_5(%arg0: i32) -> (i32, i32, i32) {
    %c0_i32 = arith.constant 0 : i32
    %c0_i32_0 = arith.constant 0 : i32
    %c0_i32_1 = arith.constant 0 : i32
    return %arg0, %c0_i32, %c0_i32_0 : i32, i32, i32
  }
  func.func @transform_6(%arg0: i32) -> (i32, i32, i32) {
    %c0_i32 = arith.constant 0 : i32
    %c0_i32_0 = arith.constant 0 : i32
    %c0_i32_1 = arith.constant 0 : i32
    return %arg0, %c0_i32, %c0_i32_0 : i32, i32, i32
  }
  func.func @transform_7(%arg0: i32) -> (i32, i32, i32) {
    %c0_i32 = arith.constant 0 : i32
    %c0_i32_0 = arith.constant 0 : i32
    %c0_i32_1 = arith.constant 0 : i32
    return %arg0, %c0_i32, %c0_i32_0 : i32, i32, i32
  }
  func.func @transform_8(%arg0: i32) -> (i32, i32, i32) {
    %c0_i32 = arith.constant 0 : i32
    %c0_i32_0 = arith.constant 0 : i32
    %c0_i32_1 = arith.constant 0 : i32
    return %arg0, %c0_i32, %c0_i32_0 : i32, i32, i32
  }
  func.func @transform_9(%arg0: i32) -> (i32, i32, i32) {
    %c0_i32 = arith.constant 0 : i32
    %c0_i32_0 = arith.constant 0 : i32
    %c0_i32_1 = arith.constant 0 : i32
    return %arg0, %c0_i32, %c0_i32_0 : i32, i32, i32
  }
  func.func @transform_10(%arg0: i32) -> (i32, i32, i32) {
    %c0_i32 = arith.constant 0 : i32
    %c0_i32_0 = arith.constant 0 : i32
    %c0_i32_1 = arith.constant 0 : i32
    return %arg0, %c0_i32, %c0_i32_0 : i32, i32, i32
  }
  func.func @transform_11(%arg0: i32) -> (i32, i32, i32) {
    %c0_i32 = arith.constant 0 : i32
    %c0_i32_0 = arith.constant 0 : i32
    %c0_i32_1 = arith.constant 0 : i32
    %c0_i32_2 = arith.constant 0 : i32
    return %c0_i32, %c0_i32_0, %c0_i32_1 : i32, i32, i32
  }
  func.func @transform_12(%arg0: i32) -> (i32, i32, i32) {
    %c0_i32 = arith.constant 0 : i32
    %0 = arith.minsi %arg0, %c0_i32 : i32
    %c0_i32_0 = arith.constant 0 : i32
    %c0_i32_1 = arith.constant 0 : i32
    %c0_i32_2 = arith.constant 0 : i32
    return %c0_i32_0, %c0_i32_1, %0 : i32, i32, i32
  }
  func.func @transform_13(%arg0: i32) -> (i32, i32, i32, i32) {
    %c0_i32 = arith.constant 0 : i32
    %c0_i32_0 = arith.constant 0 : i32
    %c0_i32_1 = arith.constant 0 : i32
    %c0_i32_2 = arith.constant 0 : i32
    return %arg0, %c0_i32, %c0_i32_0, %c0_i32_1 : i32, i32, i32, i32
  }
}

</mosaic_0001>

<bundles_post_ra>
// kernel: tpu_custom_call.1
= control target key start
LH: loop header
LB: loop body
LE: loop exit
PB: predicated region body
PF: predicated region fallthrough
CT: control target
= control target key end

     0   :  { %s5100_s0 = inlined_call_operand.hbm [shape: f32[16,128], index: 0, kind: input, shape index: {}]   ;;  %s5101_s1 = inlined_call_operand.hbm [shape: f32[16,128], index: 1, kind: input, shape index: {}]   ;;  %s5102_s2 = inlined_call_operand.hbm [shape: f32[16,128], index: 2, kind: input, shape index: {}]   ;;  %s5103_s3 = inlined_call_operand.hbm [shape: bf16[2,128,640], index: 3, kind: input, shape index: {}]   ;;  %s5104_s4 = inlined_call_operand.vmem [shape: f32[2,1,640], index: 4, kind: input, shape index: {}]   ;;  %s5105_s5 = inlined_call_operand.hbm [shape: bf16[2,128,128], index: 5, kind: input, shape index: {}]   ;;  %s5106_s6 = inlined_call_operand.vmem [shape: f32[2,1,128], index: 6, kind: input, shape index: {}]   ;;  %s5107_s7 = inlined_call_operand.hbm [shape: bf16[2,128,384], index: 7, kind: input, shape index: {}]   ;;  %s5108_s8 = inlined_call_operand.vmem [shape: f32[2,1,384], index: 8, kind: input, shape index: {}]   ;;  %s5109_s9 = inlined_call_operand.hbm [shape: bf16[2,128,128], index: 9, kind: input, shape index: {}]   ;;  %s5110_s10 = inlined_call_operand.vmem [shape: f32[2,1,128], index: 10, kind: input, shape index: {}]   ;;  %s5111_s11 = inlined_call_operand.hbm [shape: f32[2,2,128], index: 11, kind: output, shape index: {0}]   ;;  %s5112_s12 = inlined_call_operand.hbm [shape: f32[2,2,128], index: 12, kind: output, shape index: {1}]   ;;  %s5113_s13 = inlined_call_operand.hbm [shape: f32[2,2,2,8], index: 13, kind: output, shape index: {2}]  }
   0x1   :  { %5146 = sst [smem:[#allocation37_spill]] %s5100_s0 }
   0x2   :  { %5147 = sst [smem:[#allocation38_spill]] %s5101_s1 }
   0x3   :  { %5148 = sst [smem:[#allocation39_spill]] %s5102_s2 }
   0x4   :  { %5149 = sst [smem:[#allocation40_spill]] %s5103_s3 }
   0x5   :  { %5150 = sst [smem:[#allocation41_spill]] %s5104_s4 }
   0x6   :  { %5151 = sst [smem:[#allocation42_spill]] %s5105_s5 }
   0x7   :  { %5152 = sst [smem:[#allocation43_spill]] %s5106_s6 }
   0x8   :  { %5153 = sst [smem:[#allocation44_spill]] %s5108_s8 }
   0x9   :  { %5154 = sst [smem:[#allocation45_spill]] %s5110_s10 }
   0xa   :  { %5155 = sst [smem:[#allocation46_spill]] %s5111_s11 }
   0xb   :  { %5156 = sst [smem:[#allocation47_spill]] %s5112_s12 }
   0xc   :  { %5157 = sst [smem:[#allocation48_spill]] %s5113_s13 }
   0xd   :  { %19 = vsyncpa [#allocation4], 0 }
   0xe   :  { %20 = vsyncpa [#allocation7], 0 }
   0xf   :  { %21 = vsyncpa [#allocation5], 0 }
  0x10   :  { %22 = vsyncpa [#allocation14], 0 }
  0x11   :  { %24 = vsyncpa [#allocation14 + $0x1], 0  ;;  %s4208_s25 = smov 0   ;;  %s4210_s26 = smov 0  }
  0x12   :  { %s4212_s27 = smov 0   ;;  %s4214_s28 = smov 0  }
  0x13   :  { %s4216_s29 = smov 0   ;;  %s4218_s30 = smov 0  }
  0x14   :  { %s4220_s14 = smov 0  }
  0x15 LB: > { %5158 = sst [smem:[#allocation28_spill]] %s4089_s27  ;;  %s4244_s15 = sadd.s32 4294967295, %s4105_s14   ;;  %s4105_s14 = sphi %s4220_s14, %s5225_s14   ;;  %s4101_s30 = sphi %s4218_s30, %s5229_s30   ;;  %s4097_s29 = sphi %s4216_s29, %s5233_s29   ;;  %s4093_s28 = sphi %s4214_s28, %s5232_s28   ;;  %s4089_s27 = sphi %s4212_s27, %s5227_s27   ;;  %s4085_s26 = sphi %s4210_s26, %s5231_s26   ;;  %s4081_s25 = sphi %s4208_s25, %s5230_s25  }
  0x16   : > { %5159 = sst [smem:[#allocation29_spill]] %s4101_s30  ;;  %s5117_s16 = sadd.s32 4294967294, %s4105_s14  }
  0x17   : > { %s4248_s17 = sadd.s32 1, %s4105_s14   ;;  %s79_s18 = sadd.s32 1, %s4101_s30 }
  0x18   : > { %5160 = sst [smem:[#allocation30_spill]] %s4248_s17  ;;  %s76_s19 = ssub.s32 %s4105_s14, %s4248_s17 }
  0x19   : > { %p86_p0 = scmp.ne.s32.totalorder %s4101_s30, %s4097_s29  ;;  %p77_p1 = scmp.eq.s32.totalorder %s76_s19, 0 }
  0x1a   : > { %p87_p2 = scmp.eq.s32.totalorder %s4105_s14, 0  ;;  %p92_p3 = scmp.ne.s32.totalorder %s4097_s29, %s4093_s28 }
  0x1b   : > { %p5115_p4 = scmp.eq.s32.totalorder %s4244_s15, 0  ;;  %p305_p7 = scmp.lt.s32.totalorder %s4105_s14, 0 }
  0x1c   : > { %s4260_s20 = scalar_select %p77_p1, %s4101_s30, %s79_s18  }
  0x1d   : > { %p4265_p5 = por %p87_p2, %p86_p0  ;;  %p4274_p6 = por %p5115_p4, %p92_p3 }
  0x1e   : > { %5161 = sst [smem:[#allocation31_spill]] %s4260_s20  ;;  %p307_p8 = scmp.lt.s32.totalorder %s4248_s17, 0 }
  0x1f   : > { %s5163_s22 = scalar_select %p4274_p6, 1, 0 }
  0x20   : > { %s312_s23 = sadd.s32 1, %s4089_s27  ;;  %p322_p9 = scmp.ne.s32.totalorder %s4089_s27, %s4085_s26 }
  0x21   : > { %s306_s24 = scalar_select %p305_p7, %s4105_s14, 0 }
  0x22   : > { %s308_s18 = scalar_select %p307_p8, %s4248_s17, 0 }
  0x23   : > { %p5120_p10 = scmp.eq.s32.totalorder %s4244_s15, 1  ;;  %p328_p11 = scmp.ne.s32.totalorder %s4085_s26, %s4081_s25 }
  0x24   : > { %s309_s19 = ssub.s32 %s306_s24, %s308_s18  ;;  %p329_p12 = scmp.eq.s32.totalorder %s5117_s16, 1 }
  0x25   : > { %p310_p13 = scmp.eq.s32.totalorder %s309_s19, 0  ;;  %p4292_p1 = por %p5120_p10, %p322_p9 }
  0x26   : > { %p4296_p2 = por %p329_p12, %p328_p11  ;;  %p4305_p7 = por %p5120_p10, %p86_p0 }
  0x27   : > { %s5164_s20 = scalar_select %p4292_p1, 1, 0 }
  0x28   : > { %s5166_s13 = scalar_select %p4296_p2, 1, 0 }
  0x29   : > { %5165 = sst [smem:[#allocation32_spill]] %s5164_s20  ;;  %p4315_p8 = por %p329_p12, %p92_p3 }
  0x2a   : > { %5167 = sst [smem:[#allocation33_spill]] %s5166_s13  ;;  %p2979_p9 = scmp.ge.s32.totalorder %s4105_s14, 1 }
  0x2b   : > { %s5168_s25 = scalar_select %p4305_p7, 1, 0 }
  0x2c   : > { %s4310_s24 = scalar_select %p310_p13, %s4089_s27, %s312_s23  }
  0x2d   : > { %5169 = sst [smem:[#allocation34_spill]] %s5168_s25  ;;  %p362_p11 = scmp.lt.s32.totalorder %s4105_s14, 3 }
  0x2e   : > { %5170 = sst [smem:[#allocation35_spill]] %s4310_s24  ;;  %s4107_s16 = smov [#allocation3]  }
  0x2f   : > { %s5171_s18 = scalar_select %p4315_p8, 1, 0 }
  0x30   : > { %p4322_p1 = pnand %p2979_p9, %p362_p11  ;;  %s374_s17 = sshll.u32 %s4107_s16, 4  ;;  %s4326_s17 = int_to_ptr.vmem [resolvable:$true] %s374_s17 }
  0x31   : > { %5172 = sst [smem:[#allocation36_spill]] %s5171_s18  ;;  %p3484_p10 = scmp.lt.s32.totalorder %s4105_s14, 2 }
  0x32   : > { %s5173_s19 = scalar_select %p4322_p1, 1, 0 }
  0x33   : > { %p3455_p0 = pneg %p4322_p1  ;;  %p5174_p3 = scmp.eq.s32.totalorder %s4244_s15, 0 }
  0x34   : > { %p4341_p9 = pnand %p3484_p10, %p4265_p5  ;;  %s4346_s16 = sand.u32 1, %s4101_s30  }
  0x35   : > { %p4335_p12 = pnand %p3455_p0, %p5174_p3  ;;  %s3423_s27 = smul.u32 320, %s4346_s16 }
  0x36   : > { %s5176_s24 = scalar_select %p4341_p9, 1, 0 }
  0x37   : > { %s5175_s23 = scalar_select %p4335_p12, 1, 0 }
  0x38   : > { %s5177_s0 = sld [smem:[#allocation37_spill]]  ;;  %p5134_p0 = pneg %p4335_p12 }
  0x3e   : > { %s3745_s28 = scalar_lea.hbm %s5177_s0, 256 }
  0x3f   : > { %p3746_p11 = scmp.ne.s32.totalorder %s5177_s0, %s3745_s28  ;;  %p3752_p3 = scmp.lt.u32.totalorder %s3745_s28, %s5177_s0 }
  0x41   : > { %p3748_p5 = pnand %p5134_p0, %p3746_p11 }
  0x43   : > { %p3749_p10 = pneg %p3748_p5 }
  0x45   : > { %p3754_p13 = pnand %p3752_p3, %p3749_p10 }
  0x47   : > { %3757 = shalt.err (!%p3754_p13)
}
  0x48   : > { %s3758_s13 = scalar_lea.vmem %s4326_s17, 256  ;;  %p3766_p7 = scmp.lt.s32.totalorder %s4326_s17, %s4326_s17 }
  0x49   : > { %p3759_p4 = scmp.ne.s32.totalorder %s4326_s17, %s3758_s13  ;;  %p3767_p11 = scmp.lt.s32.totalorder %s3758_s13, %s3758_s13 }
  0x4b   : > { %p3761_p8 = pnand %p3759_p4, %p5134_p0  ;;  %p3768_p5 = por %p3767_p11, %p3766_p7 }
  0x4d   : > { %p3762_p2 = pneg %p3761_p8 }
  0x4f   : > { %p3769_p6 = pnand %p3768_p5, %p3762_p2 }
  0x51   : > { %3772 = shalt.err (!%p3769_p6)
}
  0x52   : > { %s5138_s11 = smov 128   ;;  %s5141_s12 = smov 8  }
  0x53   : > { %3458 = dma.hbm_to_vmem [thread:$0]  (!%p4335_p12), %s5177_s0, 256, %s4326_s17, [#allocation4], %s5138_s11, %s5138_s11, %s5141_s12  }
  0x54   : > { %s3424_s28 = smul.u32 5120, %s4105_s14  ;;  %s405_s21 = scalar_lea.vmem [#allocation8], %s3423_s27 }
  0x55   : > { %s412_s13 = sshll.u32 %s405_s21, 4  ;;  %s5178_s3 = sld [smem:[#allocation40_spill]]  ;;  %s4380_s13 = int_to_ptr.vmem [resolvable:$true] %s412_s13 }
  0x56   : > { %s5179_s8 = sand.u32 1, %s4105_s14   ;;  %p4395_p6 = pneg %p4341_p9 }
  0x57   : > { %s4389_s4 = scalar_lea.sflag [#allocation4], %s5179_s8 }
  0x58   : > { %s5180_s27 = scalar_select %p4395_p6, 1, 0 }
  0x5b   : > { %s4385_s2 = scalar_lea.hbm %s5178_s3, %s3424_s28  ;;  %s3778_s20 = scalar_lea.hbm %s5178_s3, 10240 }
  0x5c   : > { %s3773_s10 = scalar_lea.hbm %s4385_s2, 5120  ;;  %p3779_p8 = scmp.lt.u32.totalorder %s4385_s2, %s5178_s3 }
  0x5d   : > { %p3774_p4 = scmp.ne.s32.totalorder %s4385_s2, %s3773_s10  ;;  %p3780_p13 = scmp.lt.u32.totalorder %s3778_s20, %s3773_s10 }
  0x5e   : > { %p3782_p3 = scmp.lt.u32.totalorder %s3773_s10, %s4385_s2 }
  0x5f   : > { %p3776_p2 = pnand %p4395_p6, %p3774_p4  ;;  %p3781_p10 = por %p3780_p13, %p3779_p8 }
  0x61   : > { %p3777_p7 = pneg %p3776_p2  ;;  %p3783_p11 = por %p3782_p3, %p3781_p10 }
  0x63   : > { %p3784_p5 = pnand %p3783_p11, %p3777_p7 }
  0x65   : > { %3787 = shalt.err (!%p3784_p5)
}
  0x66   : > { %s3788_s8 = scalar_lea.vmem %s4380_s13, 5120  ;;  %s4110_s28 = smov [#allocation8]  }
  0x67   : > { %p3789_p4 = scmp.ne.s32.totalorder %s4380_s13, %s3788_s8  ;;  %s3793_s21 = sshll.u32 %s4110_s28, 4  ;;  %s3794_s21 = int_to_ptr.vmem [resolvable:$false] %s3793_s21 }
  0x68   : > { %s3795_s30 = scalar_lea.vmem %s3794_s21, 10240  ;;  %p3796_p1 = scmp.lt.s32.totalorder %s4380_s13, %s3794_s21 }
  0x69   : > { %p3791_p2 = pnand %p3789_p4, %p4395_p6  ;;  %p3797_p12 = scmp.lt.s32.totalorder %s3795_s30, %s3788_s8 }
  0x6b   : > { %p3792_p0 = pneg %p3791_p2  ;;  %p3798_p8 = por %p3797_p12, %p3796_p1 }
  0x6d   : > { %p3799_p13 = pnand %p3798_p8, %p3792_p0 }
  0x6f   : > { %3802 = shalt.err (!%p3799_p13)
}
  0x70   : > { %s4111_s10 = smov 320   ;;  %s4112_s17 = smov 20  }
  0x71   : > { %3465 = dma.hbm_to_vmem [thread:$0]  (!%p4341_p9), %s4385_s2, 5120, %s4380_s13, %s4389_s4, %s4111_s10, %s4111_s10, %s4112_s17  }
  0x72   : > { %s5139_s20 = sshll.u32 %s4346_s16, 6  ;;  %s5140_s25 = sshll.u32 %s4105_s14, 10 }
  0x73   : > { %s5181_s5 = sld [smem:[#allocation42_spill]]  ;;  %s433_s21 = scalar_lea.vmem [#allocation9], %s5139_s20 }
  0x74   : > { %s440_s30 = sshll.u32 %s433_s21, 4  ;;  %s4430_s30 = int_to_ptr.vmem [resolvable:$true] %s440_s30 }
  0x79   : > { %s4426_s28 = scalar_lea.hbm %s5181_s5, %s5140_s25  ;;  %s3808_s10 = scalar_lea.hbm %s5181_s5, 2048 }
  0x7a   : > { %s3803_s11 = scalar_lea.hbm %s4426_s28, 1024  ;;  %p3809_p7 = scmp.lt.u32.totalorder %s4426_s28, %s5181_s5 }
  0x7b   : > { %p3804_p1 = scmp.ne.s32.totalorder %s4426_s28, %s3803_s11  ;;  %p3810_p10 = scmp.lt.u32.totalorder %s3808_s10, %s3803_s11 }
  0x7c   : > { %p3812_p11 = scmp.lt.u32.totalorder %s3803_s11, %s4426_s28 }
  0x7d   : > { %p3806_p12 = pnand %p3804_p1, %p4395_p6  ;;  %p3811_p3 = por %p3810_p10, %p3809_p7 }
  0x7f   : > { %p3807_p0 = pneg %p3806_p12  ;;  %p3813_p5 = por %p3812_p11, %p3811_p3 }
  0x81   : > { %p3814_p4 = pnand %p3813_p5, %p3807_p0 }
  0x83   : > { %3817 = shalt.err (!%p3814_p4)
}
  0x84   : > { %s3818_s8 = scalar_lea.vmem %s4430_s30, 1024  ;;  %s4113_s21 = smov [#allocation9]  }
  0x85   : > { %p3819_p2 = scmp.ne.s32.totalorder %s4430_s30, %s3818_s8  ;;  %s3823_s2 = sshll.u32 %s4113_s21, 4  ;;  %s3824_s2 = int_to_ptr.vmem [resolvable:$false] %s3823_s2 }
  0x86   : > { %s3825_s13 = scalar_lea.vmem %s3824_s2, 2048  ;;  %p3826_p1 = scmp.lt.s32.totalorder %s4430_s30, %s3824_s2 }
  0x87   : > { %p3821_p8 = pnand %p3819_p2, %p4395_p6  ;;  %p3827_p12 = scmp.lt.s32.totalorder %s3825_s13, %s3818_s8 }
  0x89   : > { %p3822_p13 = pneg %p3821_p8  ;;  %p3828_p7 = por %p3827_p12, %p3826_p1 }
  0x8b   : > { %p3829_p10 = pnand %p3828_p7, %p3822_p13 }
  0x8d   : > { %3832 = shalt.err (!%p3829_p10)
}
  0x8e   : > { %s4114_s11 = smov 64   ;;  %s4115_s10 = smov 4  }
  0x8f   : > { %3468 = dma.hbm_to_vmem [thread:$0]  (!%p4341_p9), %s4426_s28, 1024, %s4430_s30, %s4389_s4, %s4114_s11, %s4114_s11, %s4115_s10  }
  0x90   : > { %s3425_s17 = smul.u32 192, %s4346_s16  ;;  %s4116_s25 = smov [#allocation6]  }
  0x91   : > { %s3426_s18 = smul.u32 3072, %s4105_s14  ;;  %s4466_s12 = sshll.u32 %s4116_s25, 4  ;;  %s388_s12 = int_to_ptr.vmem [resolvable:$true] %s4466_s12 }
  0x92   : > { %s460_s13 = scalar_lea.vmem [#allocation10], %s3425_s17 }
  0x93   : > { %s4462_s2 = scalar_lea.hbm %s5107_s7, %s3426_s18  ;;  %s467_s20 = sshll.u32 %s460_s13, 4  ;;  %s4464_s20 = int_to_ptr.vmem [resolvable:$true] %s467_s20 }
  0x94   : > { %s3833_s0 = scalar_lea.hbm %s4462_s2, 3072  ;;  %s3838_s18 = scalar_lea.hbm %s5107_s7, 6144 }
  0x95   : > { %p3834_p0 = scmp.ne.s32.totalorder %s4462_s2, %s3833_s0  ;;  %p3839_p5 = scmp.lt.u32.totalorder %s4462_s2, %s5107_s7 }
  0x96   : > { %p3840_p4 = scmp.lt.u32.totalorder %s3838_s18, %s3833_s0  ;;  %p3842_p8 = scmp.lt.u32.totalorder %s3833_s0, %s4462_s2 }
  0x97   : > { %p3836_p3 = pnand %p3834_p0, %p4395_p6 }
  0x98   : > { %p3841_p2 = por %p3840_p4, %p3839_p5 }
  0x99   : > { %p3837_p11 = pneg %p3836_p3 }
  0x9a   : > { %p3843_p13 = por %p3842_p8, %p3841_p2 }
  0x9c   : > { %p3844_p1 = pnand %p3843_p13, %p3837_p11 }
  0x9e   : > { %3847 = shalt.err (!%p3844_p1)
}
  0x9f   : > { %s3848_s25 = scalar_lea.vmem %s4464_s20, 3072  ;;  %s4117_s17 = smov [#allocation10]  }
  0xa0   : > { %p3849_p12 = scmp.ne.s32.totalorder %s4464_s20, %s3848_s25  ;;  %s3853_s13 = sshll.u32 %s4117_s17, 4  ;;  %s3854_s13 = int_to_ptr.vmem [resolvable:$false] %s3853_s13 }
  0xa1   : > { %s3855_s28 = scalar_lea.vmem %s3854_s13, 6144  ;;  %p3856_p0 = scmp.lt.s32.totalorder %s4464_s20, %s3854_s13 }
  0xa2   : > { %p3851_p7 = pnand %p3849_p12, %p4395_p6  ;;  %p3857_p3 = scmp.lt.s32.totalorder %s3855_s28, %s3848_s25 }
  0xa4   : > { %p3852_p10 = pneg %p3851_p7  ;;  %p3858_p5 = por %p3857_p3, %p3856_p0 }
  0xa6   : > { %p3859_p4 = pnand %p3858_p5, %p3852_p10 }
  0xa8   : > { %3862 = shalt.err (!%p3859_p4)
}
  0xa9   : > { %s4118_s0 = smov 192   ;;  %s4119_s30 = smov 12  }
  0xaa   : > { %3471 = dma.hbm_to_vmem [thread:$0]  (!%p4341_p9), %s4462_s2, 3072, %s4464_s20, %s4389_s4, %s4118_s0, %s4118_s0, %s4119_s30  }
  0xab   : > { %s5182_s1 = sld [smem:[#allocation38_spill]]  ;;  %p5183_p2 = scmp.ne.s32.totalorder %s5175_s23, 0 }
  0xad   : > { %p5184_p8 = pneg %p5183_p2 }
  0xb1   : > { %s3863_s21 = scalar_lea.hbm %s5182_s1, 256 }
  0xb2   : > { %p3864_p11 = scmp.ne.s32.totalorder %s5182_s1, %s3863_s21  ;;  %p3870_p12 = scmp.lt.u32.totalorder %s3863_s21, %s5182_s1 }
  0xb4   : > { %p3866_p13 = pnand %p3864_p11, %p5184_p8 }
  0xb6   : > { %p3867_p1 = pneg %p3866_p13 }
  0xb8   : > { %p3872_p7 = pnand %p3870_p12, %p3867_p1 }
  0xba   : > { %3875 = shalt.err (!%p3872_p7)
}
  0xbb   : > { %s3876_s20 = scalar_lea.vmem %s388_s12, 256  ;;  %p5185_p0 = pmov %p5184_p8 }
  0xbc   : > { %p3877_p10 = scmp.ne.s32.totalorder %s388_s12, %s3876_s20  ;;  %p3884_p4 = scmp.lt.s32.totalorder %s388_s12, %s388_s12 }
  0xbd   : > { %p3885_p9 = scmp.lt.s32.totalorder %s3876_s20, %s3876_s20 }
  0xbe   : > { %p3879_p3 = pnand %p3877_p10, %p5185_p0 }
  0xbf   : > { %p3886_p6 = por %p3885_p9, %p3884_p4 }
  0xc0   : > { %p3880_p5 = pneg %p3879_p3 }
  0xc2   : > { %p3887_p8 = pnand %p3886_p6, %p3880_p5 }
  0xc4   : > { %3890 = shalt.err (!%p3887_p8)
}
  0xc5   : > { %s5186_s2 = smov 8   ;;  %s5187_s0 = smov 128  }
  0xc6   : > { %3461 = dma.hbm_to_vmem [thread:$0]  (!%p5183_p2), %s5182_s1, 256, %s388_s12, [#allocation7], %s5187_s0, %s5187_s0, %s5186_s2  }
  0xc7   : > { %s5188_s8 = sshll.u32 %s4105_s14, 10  ;;  %s5189_s13 = sshll.u32 %s4346_s16, 6 }
  0xc8   : > { %s4519_s25 = scalar_lea.hbm %s5109_s9, %s5188_s8  ;;  %s488_s23 = scalar_lea.vmem [#allocation11], %s5189_s13 }
  0xc9   : > { %s495_s28 = sshll.u32 %s488_s23, 4  ;;  %s3891_s20 = scalar_lea.hbm %s4519_s25, 1024  ;;  %s4523_s28 = int_to_ptr.vmem [resolvable:$true] %s495_s28 }
  0xca   : > { %p3892_p9 = scmp.ne.s32.totalorder %s4519_s25, %s3891_s20  ;;  %p5190_p6 = scmp.ne.s32.totalorder %s5180_s27, 0 }
  0xcb   : > { %s3896_s0 = scalar_lea.hbm %s5109_s9, 2048  ;;  %p3897_p13 = scmp.lt.u32.totalorder %s4519_s25, %s5109_s9 }
  0xcc   : > { %p3894_p11 = pnand %p3892_p9, %p5190_p6  ;;  %p3898_p1 = scmp.lt.u32.totalorder %s3896_s0, %s3891_s20 }
  0xcd   : > { %p3900_p7 = scmp.lt.u32.totalorder %s3891_s20, %s4519_s25 }
  0xce   : > { %p3895_p2 = pneg %p3894_p11  ;;  %p3899_p12 = por %p3898_p1, %p3897_p13 }
  0xd0   : > { %p3901_p10 = por %p3900_p7, %p3899_p12 }
  0xd2   : > { %p3902_p0 = pnand %p3901_p10, %p3895_p2 }
  0xd4   : > { %3905 = shalt.err (!%p3902_p0)
}
  0xd5   : > { %s3906_s16 = scalar_lea.vmem %s4523_s28, 1024  ;;  %s4120_s8 = smov [#allocation11]  }
  0xd6   : > { %p3907_p3 = scmp.ne.s32.totalorder %s4523_s28, %s3906_s16  ;;  %s3911_s21 = sshll.u32 %s4120_s8, 4  ;;  %s3912_s21 = int_to_ptr.vmem [resolvable:$false] %s3911_s21 }
  0xd7   : > { %s3913_s17 = scalar_lea.vmem %s3912_s21, 2048  ;;  %p3914_p8 = scmp.lt.s32.totalorder %s4523_s28, %s3912_s21 }
  0xd8   : > { %p3909_p5 = pnand %p3907_p3, %p5190_p6  ;;  %p3915_p9 = scmp.lt.s32.totalorder %s3913_s17, %s3906_s16 }
  0xda   : > { %p3910_p4 = pneg %p3909_p5  ;;  %p3916_p11 = por %p3915_p9, %p3914_p8 }
  0xdc   : > { %p3917_p13 = pnand %p3916_p11, %p3910_p4 }
  0xde   : > { %3920 = shalt.err (!%p3917_p13)
}
  0xdf   : > { %p5191_p2 = scmp.ne.s32.totalorder %s5176_s24, 0  ;;  %p5192_p6 = scmp.ne.s32.totalorder %s5173_s19, 0 }
  0xe0   : > { %p5193_p1 = scmp.eq.s32.totalorder (!%p5192_p6), %s4244_s15, 0 }
  0xe1   : > { %3474 = dma.hbm_to_vmem [thread:$0]  (!%p5191_p2), %s4519_s25, 1024, %s4523_s28, %s4389_s4, %s4114_s11, %s4114_s11, %s4115_s10  }
  0xe2   : > { %513 = sbr.rel (%p5192_p6) target bundleno = 3622 (0xe26), region = 60 }
  0xe9   : > { %4054 = dma.done.wait (%p5193_p1), [#allocation4], 256   ;;  %p5194_p12 = pmov %p5193_p1 }
  0xea   : > { %p5195_p7 = pmov %p5193_p1 }
  0xeb   : > { %4056 = vsyncadd (%p5194_p12), [#allocation4], 4294967040 }
  0xec   : > { %4058 = dma.done.wait (%p5195_p7), [#allocation7], 256   ;;  %p5196_p10 = pmov %p5193_p1 }
  0xed   : > { %s5145_s4 = sand.u32 1, %s4244_s15   ;;  %s525_s24 = sand.u32 1, %s4097_s29  }
  0xee   : > { %4060 = vsyncadd (%p5196_p10), [#allocation7], 4294967040  ;;  %s3427_s19 = smul.u32 320, %s525_s24  ;;  %s524_s27 = scalar_lea.sflag [#allocation4], %s5145_s4 }
  0xef   : > { %p5197_p0 = scmp.ne.s32.totalorder %s5163_s22, 0 }
  0xf0   : > { %s4564_s11 = scalar_lea.vmem [#allocation8], %s3427_s19 }
  0xf1   : > { %4062 = dma.done.wait (%p5197_p0), %s524_s27, 10240  }
  0xf2   : > { %4064 = vsyncadd (%p5197_p0), %s524_s27, 4294957056  ;;  %s2994_s10 = sshll.u32 %s525_s24, 6  ;;  %s3428_s25 = smul.u32 192, %s525_s24 }
  0xf3   : > { %s619_s13 = sand.u32 1, %s4085_s26   ;;  %s2997_s28 = sshll.u32 %s525_s24, 2 }
  0xf4   : > { %s2996_s23 = sshll.u32 %s619_s13, 2  ;;  %p629_p3 = scmp.lt.s32.totalorder %s4244_s15, 1 }
  0xf5   : > { %s5198_s6 = sld [smem:[#allocation43_spill]]  ;;  %s5199_s8 = sld [smem:[#allocation45_spill]] }
  0xf6   : > { %s630_s20 = scalar_select %p629_p3, %s4244_s15, 1 }
  0xf7   : > { %s5200_s27 = sld [smem:[#allocation41_spill]]  ;;  %s5201_s1 = sld [smem:[#allocation44_spill]] }
  0xf8   : > { %s3429_s12 = smul.u32 5, %s630_s20  ;;  %s4593_s5 = scalar_lea.vmem [#allocation9], %s2994_s10 }
  0xf9   : > { %s3430_s18 = smul.u32 3, %s630_s20  ;;  %s4595_s2 = scalar_lea.vmem [#allocation10], %s3428_s25 }
  0xfa   : > { %s4597_s0 = scalar_lea.vmem [#allocation11], %s2994_s10  ;;  %p5202_p5 = scmp.ne.s32.totalorder %s4244_s15, 0 }
  0xfb   : > { %s4576_s30 = scalar_lea.vmem %s5198_s6, %s630_s20  ;;  %s4581_s21 = scalar_lea.vmem %s5199_s8, %s630_s20 }
  0xfc   : > { %s4599_s6 = scalar_lea.vmem [#allocation13], %s2996_s23  ;;  %s4601_s20 = scalar_lea.vmem [#allocation15], %s2997_s28 }
  0xfd   : > { %s4586_s4 = scalar_lea.vmem %s5200_s27, %s3429_s12  ;;  %s4591_s3 = scalar_lea.vmem %s5201_s1, %s3430_s18 }
  0xfe   : > { %649 = sbr.rel (%p5202_p5) target bundleno = 284 (0x11c), region = 88 }
 0x105   : > { %s4121_s12 = smov [#allocation2]   ;;  %s5203_s1 = sld [smem:[#allocation39_spill]] }
 0x106   : > { %s657_s16 = sshll.u32 %s4121_s12, 4  ;;  %s658_s16 = int_to_ptr.vmem [resolvable:$true] %s657_s16 }
 0x10b   : > { %s3921_s18 = scalar_lea.hbm %s5203_s1, 256 }
 0x10c   : > { %p3922_p4 = scmp.ne.s32.totalorder %s5203_s1, %s3921_s18  ;;  %p3925_p8 = scmp.lt.u32.totalorder %s3921_s18, %s5203_s1 }
 0x10e   : > { %p3927_p9 = pnand %p3925_p8, %p3922_p4 }
 0x110   : > { %3930 = shalt.err (!%p3927_p9)  }
 0x111   : > { %s3931_s23 = scalar_lea.vmem %s658_s16, 256  ;;  %p3936_p13 = scmp.lt.s32.totalorder %s658_s16, %s658_s16 }
 0x112   : > { %p3932_p11 = scmp.ne.s32.totalorder %s658_s16, %s3931_s23  ;;  %p3937_p2 = scmp.lt.s32.totalorder %s3931_s23, %s3931_s23 }
 0x114   : > { %p3938_p6 = por %p3937_p2, %p3936_p13 }
 0x116   : > { %p3939_p1 = pnand %p3938_p6, %p3932_p11 }
 0x118   : > { %3942 = shalt.err (!%p3939_p1)  }
 0x119   : > { %660 = dma.hbm_to_vmem [thread:$0]  %s5203_s1, 256, %s658_s16, [#allocation16] }
 0x11a   : > { %4065 = dma.done.wait [#allocation16], 256 }
 0x11b   : > { %4066 = vsyncadd [#allocation16], 4294967040 }
 0x11c PF: > { %v3571_v0 = vld [vmem:[%s4564_s11 + $0x4] ss:$20 sps:$4 sm:$0xff]   ;;  %v3573_v1 = vld [vmem:[%s4564_s11] ss:$20 sps:$4 sm:$0xff]   ;;  %v4122_v2 = vmov 0   ;;  %v4123_v33 = vmov 0.0   ;;  %v721_v45 = vlaneseq }
 0x11d   : > { %986 = vmatprep.mubr.bf16.mxu0 %v4122_v2  ;;  %1029 = vmatprep.mubr.bf16.mxu1 %v4122_v2  ;;  %v3574_v3 = vld [vmem:[%s4564_s11 + $0x2c] ss:$20 sps:$4 sm:$0xff]   ;;  %v3576_v4 = vld [vmem:[%s4564_s11 + $0x28] ss:$20 sps:$4 sm:$0xff]   ;;  %v3579_v6 = vld [vmem:[%s4564_s11 + $0x50] ss:$20 sps:$4 sm:$0xff]  }
 0x11e   : > { %954 = vmatprep.subr.bf16.mxu0 %v3571_v0  ;;  %v3577_v5 = vld [vmem:[%s4564_s11 + $0x54] ss:$20 sps:$4 sm:$0xff]   ;;  %v3580_v7 = vld [vmem:[%s4564_s11 + $0x7c] ss:$20 sps:$4 sm:$0xff]   ;;  %v3582_v8 = vld [vmem:[%s4564_s11 + $0x78] ss:$20 sps:$4 sm:$0xff]  }
 0x11f   : > { %955 = vmatpush1.bf16.msra.mxu0 %v3573_v1  ;;  %v3583_v9 = vld [vmem:[%s4564_s11 + $0xa4] ss:$20 sps:$4 sm:$0xff]   ;;  %v3595_v10 = vld [vmem:[%s4564_s11 + $0xc] ss:$20 sps:$4 sm:$0xff]   ;;  %v3597_v11 = vld [vmem:[%s4564_s11 + $0x8] ss:$20 sps:$4 sm:$0xff]  }
 0x120   : > { %956 = vmatprep.subr.bf16.mxu0 %v3574_v3  ;;  %v3585_v12 = vld [vmem:[%s4564_s11 + $0xa0] ss:$20 sps:$4 sm:$0xff]   ;;  %997 = vmatprep.subr.bf16.mxu1 %v3595_v10  ;;  %v3601_v15 = vld [vmem:[%s4564_s11 + $0x30] ss:$20 sps:$4 sm:$0xff]   ;;  %v3588_v17 = vld [vmem:[%s4564_s11 + $0xc8] ss:$20 sps:$4 sm:$0xff]  }
 0x121   : > { %v3586_v13 = vld [vmem:[%s4564_s11 + $0xcc] ss:$20 sps:$4 sm:$0xff]   ;;  %v3599_v14 = vld [vmem:[%s4564_s11 + $0x34] ss:$20 sps:$4 sm:$0xff]   ;;  %998 = vmatpush1.bf16.msra.mxu1 %v3597_v11  ;;  %v3603_v16 = vld [vmem:[%s4564_s11 + $0x5c] ss:$20 sps:$4 sm:$0xff]  }
 0x122   : > { %999 = vmatprep.subr.bf16.mxu1 %v3599_v14  ;;  %v3589_v18 = vld [vmem:[%s4564_s11 + $0xf4] ss:$20 sps:$4 sm:$0xff]   ;;  %v3605_v19 = vld [vmem:[%s4564_s11 + $0x58] ss:$20 sps:$4 sm:$0xff]   ;;  %v3591_v21 = vld [vmem:[%s4564_s11 + $0xf0] ss:$20 sps:$4 sm:$0xff]  }
 0x123   : > { %957 = vmatpush1.bf16.msra.mxu0 %v3576_v4  ;;  %v3607_v20 = vld [vmem:[%s4564_s11 + $0x84] ss:$20 sps:$4 sm:$0xff]   ;;  %v3592_v22 = vld [vmem:[%s4564_s11 + $0x11c] ss:$20 sps:$4 sm:$0xff]   ;;  %v3609_v23 = vld [vmem:[%s4564_s11 + $0x80] ss:$20 sps:$4 sm:$0xff]  }
 0x124   : > { %958 = vmatprep.subr.bf16.mxu0 %v3577_v5  ;;  %v3611_v24 = vld [vmem:[%s4564_s11 + $0xac] ss:$20 sps:$4 sm:$0xff]   ;;  %v4642_v26 = vld [vmem:[#allocation2] sm:$0xff]  ;;  %v4644_v27 = vld [vmem:[#allocation2 + $0x8] sm:$0xff]  ;;  %vm4124_vm0 = vmmov 0   ;;  %v4664_v46 = vshrl.u32 %v721_v45, 7 }
 0x125   : > { %1000 = vmatpush1.bf16.msra.mxu1 %v3601_v15  ;;  %v3594_v25 = vld [vmem:[%s4564_s11 + $0x118] ss:$20 sps:$4 sm:$0xff]   ;;  %v3613_v28 = vld [vmem:[%s4564_s11 + $0xa8] ss:$20 sps:$4 sm:$0xff]   ;;  %v670_v30 = vpack.c.bf16 %v4644_v27, %v4642_v26  ;;  %v3598_v31 = vld [vmem:[%s4564_s11 + $0x10] ss:$20 sps:$4 sm:$0xff]  }
 0x126   : > { %1001 = vmatprep.subr.bf16.mxu1 %v3603_v16  ;;  %v3615_v29 = vld [vmem:[%s4564_s11 + $0xd4] ss:$20 sps:$4 sm:$0xff]   ;;  %v3617_v32 = vld [vmem:[%s4564_s11 + $0xd0] ss:$20 sps:$4 sm:$0xff]   ;;  %v3602_v35 = vld [vmem:[%s4564_s11 + $0x38] ss:$20 sps:$4 sm:$0xff]  }
 0x127   : > { %959 = vmatpush1.bf16.msra.mxu0 %v3579_v6  ;;  %v3619_v34 = vld [vmem:[%s4564_s11 + $0xfc] ss:$20 sps:$4 sm:$0xff]   ;;  %v3621_v36 = vld [vmem:[%s4564_s11 + $0xf8] ss:$20 sps:$4 sm:$0xff]   ;;  %v3606_v38 = vld [vmem:[%s4564_s11 + $0x60] ss:$20 sps:$4 sm:$0xff]  }
 0x128   : > { %960 = vmatprep.subr.bf16.mxu0 %v3580_v7  ;;  %v3623_v37 = vld [vmem:[%s4564_s11 + $0x124] ss:$20 sps:$4 sm:$0xff]   ;;  %v3625_v39 = vld [vmem:[%s4564_s11 + $0x120] ss:$20 sps:$4 sm:$0xff]   ;;  %v3610_v40 = vld [vmem:[%s4564_s11 + $0x88] ss:$20 sps:$4 sm:$0xff]  }
 0x129   : > { %1002 = vmatpush1.bf16.msra.mxu1 %v3605_v19  ;;  %v3614_v41 = vld [vmem:[%s4564_s11 + $0xb0] ss:$20 sps:$4 sm:$0xff]   ;;  %v3618_v42 = vld [vmem:[%s4564_s11 + $0xd8] ss:$20 sps:$4 sm:$0xff]   ;;  %v3622_v43 = vld [vmem:[%s4564_s11 + $0x100] ss:$20 sps:$4 sm:$0xff]  }
 0x12a   : > { %1003 = vmatprep.subr.bf16.mxu1 %v3607_v20  ;;  %v3626_v44 = vld [vmem:[%s4564_s11 + $0x128] ss:$20 sps:$4 sm:$0xff]   ;;  %v4667_v47 = vsub.s32 0, %v4664_v46  ;;  %v719_v48 = vld [vmem:[%s4586_s4] sm:$0x1f]  ;;  %v4671_v49 = vsub.s32 1, %v4664_v46 }
 0x12b   : > { %961 = vmatpush1.bf16.msra.mxu0 %v3582_v8  ;;  %s4125_s11 = smov 64   ;;  %v4676_v59 = vsub.s32 2, %v4664_v46  ;;  %v735_v61 = vsub.s32 3, %v4664_v46  ;;  %v739_v10 = vsub.s32 4, %v4664_v46  ;;  %v668_v19 = vld [vmem:[#allocation6] sm:$0xff]  ;;  %p3039_p12 = scmp.ge.s32.totalorder %s4244_s15, 1 }
 0x12c   : > { %962 = vmatprep.subr.bf16.mxu0 %v3583_v9  ;;  %v724_v50 = vrot.slane %v719_v48, %v4667_v47  ;;  %v728_v51 = vrot.slane %v719_v48, %v4671_v49  ;;  %vm4127_vm1 = vmmov (!%p3039_p12), 0   ;;  %vm1197_vm3 = vcmask (!%p3039_p12), 64512  }
 0x12d   : > { %1004 = vmatpush1.bf16.msra.mxu1 %v3609_v23  ;;  %v732_v62 = vrot.slane %v719_v48, %v4676_v59  ;;  %v736_v63 = vrot.slane %v719_v48, %v735_v61  ;;  %v740_v11 = vrot.slane %v719_v48, %v739_v10  ;;  %v1114_v48 = vand.u32 (!%p3039_p12), 127, %v721_v45 }
 0x12e   : > { %1005 = vmatprep.subr.bf16.mxu1 %v3611_v24  ;;  %vm1225_vm4 = vcmask (!%p3039_p12), 1043456   ;;  %vm1833_vm5 = vcmask (!%p3039_p12), 64518  }
 0x12f   : > { %963 = vmatpush1.bf16.msra.mxu0 %v3585_v12  ;;  %vm1115_vm2 = vcmp.gt.s32.totalorder (!%p3039_p12), %v1114_v48, %v4664_v46  ;;  %v3650_v48 = vld [vmem:[%s4595_s2 + $0x50] ss:$12 sps:$4 sm:$0xff] (!%p3039_p12)  }
 0x130   : > { %964 = vmatprep.subr.bf16.mxu0 %v3586_v13 }
 0x131   : > { %1006 = vmatpush1.bf16.msra.mxu1 %v3613_v28 }
 0x132   : > { %1007 = vmatprep.subr.bf16.mxu1 %v3615_v29  ;;  %v669_v29 = vld [vmem:[#allocation6 + $0x8] sm:$0xff] }
 0x133   : > { %965 = vmatpush1.bf16.msra.mxu0 %v3588_v17 }
 0x134   : > { %966 = vmatprep.subr.bf16.mxu0 %v3589_v18  ;;  %v666_v18 = vld [vmem:[#allocation3] sm:$0xff] }
 0x135   : > { %1008 = vmatpush1.bf16.msra.mxu1 %v3617_v32 }
 0x136   : > { %1009 = vmatprep.subr.bf16.mxu1 %v3619_v34 }
 0x137   : > { %967 = vmatpush1.bf16.msra.mxu0 %v3591_v21 }
 0x138   : > { %968 = vmatprep.subr.bf16.mxu0 %v3592_v22 }
 0x139   : > { %1010 = vmatpush1.bf16.msra.mxu1 %v3621_v36 }
 0x13a   : > { %1011 = vmatprep.subr.bf16.mxu1 %v3623_v37 }
 0x13b   : > { %969 = vmatpush1.bf16.msra.mxu0 %v3594_v25  ;;  %v667_v25 = vld [vmem:[#allocation3 + $0x8] sm:$0xff] }
 0x13c   : > { %3221 = vmatprep.subr.bf16.mxu0 %v4123_v33 }
 0x13d   : > { %1012 = vmatpush1.bf16.msra.mxu1 %v3625_v39 }
 0x13e   : > { %987 = vmatmul.mubr.bf16.vlgmr.msra.gmra.mrb[0].mxu0 %v670_v30 }
 0x13f   : > { %3222 = vmatpush3.bf16.msra.mxu0 %v3598_v31  ;;  %3237 = vmatprep.mubr.msk.bf16.mxu0 %vm4124_vm0, %v4123_v33 }
 0x140   : > { %3223 = vmatprep.subr.bf16.mxu0 %v4123_v33  ;;  %1030 = vmatmul.mubr.bf16.vlgmr.msra.gmra.mrb[0].mxu1 %v670_v30 }
 0x143   : > { %3224 = vmatpush3.bf16.msra.mxu0 %v3602_v35 }
 0x144   : > { %3225 = vmatprep.subr.bf16.mxu0 %v4123_v33 }
 0x147   : > { %3226 = vmatpush3.bf16.msra.mxu0 %v3606_v38 }
 0x148   : > { %3227 = vmatprep.subr.bf16.mxu0 %v4123_v33 }
 0x14b   : > { %3228 = vmatpush3.bf16.msra.mxu0 %v3610_v40 }
 0x14c   : > { %3229 = vmatprep.subr.bf16.mxu0 %v4123_v33 }
 0x14f   : > { %3230 = vmatpush3.bf16.msra.mxu0 %v3614_v41 }
 0x150   : > { %3231 = vmatprep.subr.bf16.mxu0 %v4123_v33 }
 0x153   : > { %3232 = vmatpush3.bf16.msra.mxu0 %v3618_v42  ;;  %v4126_v42 = vmov (!%p3039_p12), 0.0  }
 0x154   : > { %3233 = vmatprep.subr.bf16.mxu0 %v4123_v33  ;;  %3247 = vmatprep.subr.bf16.mxu1 (!%p3039_p12), %v4126_v42 }
 0x155   : > { %3249 = vmatprep.mubr.msk.bf16.mxu1 (!%p3039_p12), %vm4127_vm1, %v4126_v42 }
 0x157   : > { %3234 = vmatpush3.bf16.msra.mxu0 %v3622_v43 }
 0x158   : > { %3235 = vmatprep.subr.bf16.mxu0 %v4123_v33 }
 0x15b   : > { %3236 = vmatpush3.bf16.msra.mxu0 %v3626_v44 }
 0x15c   : > { %3241 = vmatprep.subr.bf16.mxu0 (!%p3039_p12), %v4126_v42 }
 0x15e   : > { %3238 = vmatmul.mubr.bf16.vlgmr.msra.gmra.mrb[4].mxu0 %v670_v30 }
 0x15f   : > { %3243 = vmatprep.mubr.msk.bf16.mxu0 (!%p3039_p12), %vm4127_vm1, %v4126_v42 }
 0x211   : > { %v988_v52 = vpop.f32.mrb[0].mxu0 }
 0x212   : > { %v989_v53 = vadd.f32 %v988_v52, %v724_v50  ;;  %v990_v54 = vpop.f32.mrb[1].mxu0 }
 0x213   : > { %v991_v55 = vadd.f32 %v990_v54, %v728_v51  ;;  %v992_v56 = vpop.f32.mrb[2].mxu0  ;;  %v1031_v0 = vpop.f32.mrb[0].mxu1 }
 0x214   : > { %v994_v57 = vpop.f32.mrb[3].mxu0  ;;  %1083 = vrot.lane.b32.xlu1 %v989_v53, %s4125_s11  ;;  %v993_v58 = vadd.f32 %v992_v56, %v724_v50  ;;  %v1032_v1 = vadd.f32 %v1031_v0, %v732_v62  ;;  %v1033_v2 = vpop.f32.mrb[1].mxu1  ;;  %v1081_v21 = vmul.f32 %v989_v53, %v666_v18  ;;  %v1116_v50 = vsel (!%p3039_p12), %vm1115_vm2, -1e+30, %v4126_v42 }
 0x215   : > { %1093 = vrot.lane.b32.xlu0 %v991_v55, %s4125_s11  ;;  %v995_v60 = vadd.f32 %v994_v57, %v728_v51  ;;  %v4680_v3 = vadd.f32 %v1033_v2, %v736_v63  ;;  %v1035_v4 = vpop.f32.mrb[2].mxu1  ;;  %v1091_v24 = vmul.f32 %v991_v55, %v666_v18 }
 0x216   : > { %v4682_v5 = vpack.c.bf16 %v1032_v1, %v1032_v1  ;;  %v1036_v6 = vadd.f32 %v1035_v4, %v732_v62  ;;  %v1037_v7 = vpop.f32.mrb[3].mxu1  ;;  %v1082_v33 = vmul.f32 %v993_v58, %v667_v25 }
 0x217   : > { %v4684_v8 = vadd.f32 %v1037_v7, %v736_v63  ;;  %v1092_v36 = vmul.f32 %v995_v60, %v667_v25  ;;  %v3627_v25 = vld [vmem:[%s4593_s5] sm:$0xff] (!%p3039_p12)  }
 0x218   : > { %1085 = vrot.lane.b32.xlu1 %v993_v58, %s4125_s11  ;;  %v4686_v9 = vpack.c.bf16 %v1036_v6, %v1036_v6 }
 0x219   : > { %1095 = vrot.lane.b32.xlu0 %v995_v60, %s4125_s11 }
 0x231   : > { %v1074_v12 = vpop.f32.mrb[4].mxu0 }
 0x232   : > { %v4689_v13 = vadd.f32 %v1074_v12, %v740_v11  ;;  %v3239_v14 = vpop.f32.mrb[5].mxu0 }
 0x233   : > { %v1077_v15 = vpop.f32.mrb[6].mxu0 }
 0x234   : > { %v4691_v16 = vadd.f32 %v1077_v15, %v740_v11  ;;  %v3240_v17 = vpop.f32.mrb[7].mxu0  ;;  %v1227_v15 = vsel (!%p3039_p12), %vm1225_vm4, %v4682_v5, 0 }
 0x235   : > { %v1273_v17 = vsel (!%p3039_p12), %vm1225_vm4, %v4686_v9, 0 }
 0x286   : > { %v1084_v20 = vpop.permute.xlu1 %1083 }
 0x287   : > { %v1087_v22 = vmul.f32 %v1084_v20, %v668_v19  ;;  %v1094_v23 = vpop.permute.xlu0 %1093 }
 0x288   : > { %v1097_v28 = vmul.f32 %v1094_v23, %v668_v19 }
 0x289   : > { %v4693_v30 = vadd.f32 %v1087_v22, %v1081_v21 }
 0x28a   : > { %v1099_v31 = vadd.f32 %v1097_v28, %v1091_v24  ;;  %v1086_v32 = vpop.permute.xlu1 %1085  ;;  %1108 = sbr.rel (%p3039_p12) target bundleno = 2087 (0x827), region = 97 }
 0x28b   : > { %v1088_v34 = vmul.f32 %v1086_v32, %v669_v29  ;;  %v1096_v35 = vpop.permute.xlu0 %1095  ;;  %v1109_v43 = vpack.c.bf16 (!%p3039_p12), %v4693_v30, %v4693_v30  ;;  %v3630_v32 = vld [vmem:[%s4593_s5 + $0x18] sm:$0xff] (!%p3039_p12)  }
 0x28c   : > { %v4695_v37 = vpack.c.bf16 %v1099_v31, %v1099_v31  ;;  %v1098_v38 = vmul.f32 %v1096_v35, %v669_v29  ;;  %v3628_v29 = vld [vmem:[%s4593_s5 + $0x8] sm:$0xff] (!%p3039_p12)   ;;  %v3629_v31 = vld [vmem:[%s4593_s5 + $0x10] sm:$0xff] (!%p3039_p12)  }
 0x28d   : > { %v4697_v39 = vadd.f32 %v1088_v34, %v1082_v33  ;;  %v3631_v33 = vld [vmem:[%s4593_s5 + $0x20] sm:$0xff] (!%p3039_p12)   ;;  %v3632_v34 = vld [vmem:[%s4593_s5 + $0x28] sm:$0xff] (!%p3039_p12)   ;;  %v3633_v35 = vld [vmem:[%s4593_s5 + $0x30] sm:$0xff] (!%p3039_p12)  }
 0x28e   : > { %v1100_v40 = vadd.f32 %v1098_v38, %v1092_v36  ;;  %3242 = vmatpush3.bf16.xpose.msra.mxu0 (!%p3039_p12), %v4695_v37  ;;  %v3634_v36 = vld [vmem:[%s4593_s5 + $0x38] sm:$0xff] (!%p3039_p12)   ;;  %v3637_v38 = vld [vmem:[%s4595_s2 + $0x4] ss:$12 sps:$4 sm:$0xff] (!%p3039_p12)  }
 0x28f   : > { %3253 = vmatprep.subr.bf16.mxu0 (!%p3039_p12), %v4126_v42  ;;  %v1110_v44 = vpack.c.bf16 (!%p3039_p12), %v4697_v39, %v4697_v39 }
 0x290   : > { %v4699_v41 = vpack.c.bf16 %v1100_v40, %v1100_v40  ;;  %v3638_v40 = vld [vmem:[%s4595_s2 + $0x8] ss:$12 sps:$4 sm:$0xff] (!%p3039_p12)  }
 0x292   : > { %3248 = vmatpush3.bf16.xpose.msra.mxu1 %v4699_v41 }
 0x293   : > { %3259 = vmatprep.subr.bf16.mxu1 %v4126_v42 }
 0x295   : > { %3244 = vmatmul.mubr.bf16.vlgmr.msra.gmra.mrb[0].mxu0 %v1109_v43  ;;  %v3642_v43 = vld [vmem:[%s4595_s2 + $0x20] ss:$12 sps:$4 sm:$0xff]  }
 0x296   : > { %3255 = vmatprep.mubr.msk.bf16.mxu0 %vm4127_vm1, %v4126_v42  ;;  %3254 = vmatpush3.bf16.msra.mxu0 %v1227_v15  ;;  %v3659_v15 = vld [vmem:[%s4595_s2 + $0x90] ss:$12 sps:$4 sm:$0xff]  }
 0x297   : > { %3285 = vmatprep.subr.bf16.mxu0 %v4126_v42 }
 0x299   : > { %3250 = vmatmul.mubr.bf16.vlgmr.msra.gmra.mrb[0].mxu1 %v1110_v44  ;;  %v3646_v44 = vld [vmem:[%s4595_s2 + $0x38] ss:$12 sps:$4 sm:$0xff]  }
 0x29a   : > { %3261 = vmatprep.mubr.msk.bf16.mxu1 %vm4127_vm1, %v4126_v42  ;;  %3260 = vmatpush3.bf16.msra.mxu1 %v1273_v17  ;;  %v3662_v17 = vld [vmem:[%s4595_s2 + $0x98] ss:$12 sps:$4 sm:$0xff]  }
 0x29b   : > { %3265 = vmatprep.subr.bf16.mxu1 %v4126_v42 }
 0x368   : > { %v1151_v51 = vpop.f32.mrb[0].mxu0 }
 0x369   : > { %v1152_v53 = vadd.f32 %v1151_v51, %v1116_v50  ;;  %v3245_v54 = vpop.f32.mrb[1].mxu0 }
 0x36a   : > { %v1154_v57 = vpop.f32.mrb[2].mxu0 }
 0x36b   : > { %v3246_v60 = vpop.f32.mrb[3].mxu0  ;;  %v1198_v62 = vsel %vm1197_vm3, %v1152_v53, -inf }
 0x36c   : > { %v1191_v52 = vpop.f32.mrb[0].mxu1  ;;  %1199 = vmax.xlane.f32.xlu0 %v1198_v62  ;;  %v3641_v60 = vld [vmem:[%s4595_s2 + $0x1c] ss:$12 sps:$4 sm:$0xff]  }
 0x36d   : > { %v1192_v55 = vadd.f32 %v1191_v52, %v1116_v50  ;;  %v3251_v56 = vpop.f32.mrb[1].mxu1  ;;  %v3654_v50 = vld [vmem:[%s4595_s2 + $0x68] ss:$12 sps:$4 sm:$0xff]  }
 0x36e   : > { %v1194_v58 = vpop.f32.mrb[2].mxu1  ;;  %v3635_v56 = vld [vmem:[%s4595_s2] ss:$12 sps:$4 sm:$0xff]  }
 0x36f   : > { %v3252_v61 = vpop.f32.mrb[3].mxu1  ;;  %v1201_v63 = vsel %vm1197_vm3, %v1192_v55, -inf }
 0x370   : > { %1202 = vmax.xlane.f32.xlu0 %v1201_v63  ;;  %v3639_v63 = vld [vmem:[%s4595_s2 + $0x18] ss:$12 sps:$4 sm:$0xff]  }
 0x3f9   : > { %v1200_v0 = vpop.xlane.xlu0 %1199 }
 0x3fa   : > { %v1204_v1 = vsub.f32 %v1152_v53, %v1200_v0  ;;  %v3645_v0 = vld [vmem:[%s4595_s2 + $0x34] ss:$12 sps:$4 sm:$0xff]  }
 0x3fc   : > { %v1206_v2 = vmul.f32 1.442695, %v1204_v1  ;;  %v3643_v1 = vld [vmem:[%s4595_s2 + $0x30] ss:$12 sps:$4 sm:$0xff]  }
 0x3fd   : > { %v1203_v4 = vpop.xlane.xlu0 %1202 }
 0x3fe   : > { %3675 = vpow2.f32 %v1206_v2  ;;  %v1205_v6 = vsub.f32 %v1192_v55, %v1203_v4  ;;  %v3649_v2 = vld [vmem:[%s4595_s2 + $0x4c] ss:$12 sps:$4 sm:$0xff]   ;;  %v3647_v4 = vld [vmem:[%s4595_s2 + $0x48] ss:$12 sps:$4 sm:$0xff]  }
 0x400   : > { %v1208_v7 = vmul.f32 1.442695, %v1205_v6  ;;  %v3653_v6 = vld [vmem:[%s4595_s2 + $0x64] ss:$12 sps:$4 sm:$0xff]  }
 0x402   : > { %3677 = vpow2.f32 %v1208_v7  ;;  %v3651_v7 = vld [vmem:[%s4595_s2 + $0x60] ss:$12 sps:$4 sm:$0xff]  }
 0x408   : > { %v3676_v10 = vpop.eup %3675 }
 0x409   : > { %v1210_v11 = vsel %vm1197_vm3, %v3676_v10, 0.0 }
 0x40a   : > { %1211 = vadd.xlane.f32.xlu1 %v1210_v11  ;;  %v3655_v11 = vld [vmem:[%s4595_s2 + $0x78] ss:$12 sps:$4 sm:$0xff]  }
 0x40c   : > { %v3678_v12 = vpop.eup %3677 }
 0x40d   : > { %v1213_v14 = vsel %vm1197_vm3, %v3678_v12, 0.0 }
 0x40e   : > { %1214 = vadd.xlane.f32.xlu1 %v1213_v14  ;;  %v3661_v14 = vld [vmem:[%s4595_s2 + $0x94] ss:$12 sps:$4 sm:$0xff]  }
 0x497   : > { %v1212_v18 = vpop.xlane.xlu1 %1211 }
 0x498   : > { %3679 = vrcp.f32 %v1212_v18  ;;  %v3665_v18 = vld [vmem:[%s4595_s2 + $0xac] ss:$12 sps:$4 sm:$0xff]  }
 0x49b   : > { %v1215_v19 = vpop.xlane.xlu1 %1214 }
 0x49c   : > { %3681 = vrcp.f32 %v1215_v19  ;;  %v3663_v19 = vld [vmem:[%s4595_s2 + $0xa8] ss:$12 sps:$4 sm:$0xff]  }
 0x4a2   : > { %v3680_v20 = vpop.eup %3679 }
 0x4a3   : > { %v1218_v21 = vmul.f32 %v3680_v20, %v3676_v10  ;;  %v3657_v10 = vld [vmem:[%s4595_s2 + $0x7c] ss:$12 sps:$4 sm:$0xff]  }
 0x4a4   : > { %v3666_v20 = vld [vmem:[%s4595_s2 + $0xb0] ss:$12 sps:$4 sm:$0xff]  }
 0x4a5   : > { %1834 = vst.msk [vmem:[%s4601_s20 - $0x6] sm:$0xc0] %vm1833_vm5, %v1218_v21  ;;  %v1220_v22 = vpack.c.bf16 %v1218_v21, %v1218_v21  ;;  %v4128_v21 = vmov 0  }
 0x4a6   : > { %v3682_v23 = vpop.eup %3681 }
 0x4a7   : > { %v1219_v24 = vmul.f32 %v3682_v23, %v3678_v12  ;;  %3256 = vmatmul.mubr.msk.bf16.vlgmr.msra.gmra.mrb[4].mxu0 %vm1197_vm3, %v1220_v22  ;;  %v3658_v12 = vld [vmem:[%s4595_s2 + $0x80] ss:$12 sps:$4 sm:$0xff]   ;;  %v3042_v22 = vld [vmem:[%s4576_s30] ss:$0 sm:$0xff] }
 0x4a8   : > { %3301 = vmatprep.mubr.msk.bf16.mxu0 %vm4127_vm1, %v4126_v42  ;;  %3286 = vmatpush3.bf16.msra.mxu0 %v3638_v40  ;;  %v3668_v40 = vld [vmem:[%s4597_s0 + $0x8] sm:$0xff]  }
 0x4a9   : > { %1835 = vst.msk [vmem:[%s4601_s20 - $0x4] sm:$0xc0] %vm1833_vm5, %v1219_v24  ;;  %v1221_v28 = vpack.c.bf16 %v1219_v24, %v1219_v24  ;;  %3287 = vmatprep.subr.bf16.mxu0 %v4126_v42 }
 0x4ab   : > { %3262 = vmatmul.mubr.msk.bf16.vlgmr.msra.gmra.mrb[4].mxu1 %vm1197_vm3, %v1221_v28 }
 0x4ac   : > { %3266 = vmatpush3.bf16.msra.mxu1 %v3627_v25  ;;  %3281 = vmatprep.mubr.msk.bf16.mxu1 %vm4127_vm1, %v4126_v42 }
 0x4ad   : > { %3267 = vmatprep.subr.bf16.mxu1 %v4126_v42  ;;  %3288 = vmatpush3.bf16.msra.mxu0 %v3642_v43  ;;  %v3669_v43 = vld [vmem:[%s4597_s0 + $0x10] sm:$0xff]  }
 0x4ae   : > { %3289 = vmatprep.subr.bf16.mxu0 %v4126_v42 }
 0x4b0   : > { %3268 = vmatpush3.bf16.msra.mxu1 %v3628_v29 }
 0x4b1   : > { %3269 = vmatprep.subr.bf16.mxu1 %v4126_v42  ;;  %3290 = vmatpush3.bf16.msra.mxu0 %v3646_v44  ;;  %v3670_v44 = vld [vmem:[%s4597_s0 + $0x18] sm:$0xff]  }
 0x4b2   : > { %3291 = vmatprep.subr.bf16.mxu0 %v4126_v42 }
 0x4b4   : > { %3270 = vmatpush3.bf16.msra.mxu1 %v3629_v31 }
 0x4b5   : > { %3271 = vmatprep.subr.bf16.mxu1 %v4126_v42  ;;  %3292 = vmatpush3.bf16.msra.mxu0 %v3650_v48  ;;  %v3671_v48 = vld [vmem:[%s4597_s0 + $0x20] sm:$0xff]  }
 0x4b6   : > { %3293 = vmatprep.subr.bf16.mxu0 %v4126_v42 }
 0x4b8   : > { %3272 = vmatpush3.bf16.msra.mxu1 %v3630_v32 }
 0x4b9   : > { %3273 = vmatprep.subr.bf16.mxu1 %v4126_v42  ;;  %3294 = vmatpush3.bf16.msra.mxu0 %v3654_v50  ;;  %v3672_v50 = vld [vmem:[%s4597_s0 + $0x28] sm:$0xff]  }
 0x4ba   : > { %3295 = vmatprep.subr.bf16.mxu0 %v4126_v42 }
 0x4bc   : > { %3274 = vmatpush3.bf16.msra.mxu1 %v3631_v33 }
 0x4bd   : > { %3275 = vmatprep.subr.bf16.mxu1 %v4126_v42  ;;  %3296 = vmatpush3.bf16.msra.mxu0 %v3658_v12 }
 0x4be   : > { %3297 = vmatprep.subr.bf16.mxu0 %v4126_v42 }
 0x4c0   : > { %3276 = vmatpush3.bf16.msra.mxu1 %v3632_v34 }
 0x4c1   : > { %3277 = vmatprep.subr.bf16.mxu1 %v4126_v42  ;;  %3298 = vmatpush3.bf16.msra.mxu0 %v3662_v17 }
 0x4c2   : > { %3299 = vmatprep.subr.bf16.mxu0 %v4126_v42 }
 0x4c4   : > { %3278 = vmatpush3.bf16.msra.mxu1 %v3633_v35 }
 0x4c5   : > { %3279 = vmatprep.subr.bf16.mxu1 %v4126_v42  ;;  %3300 = vmatpush3.bf16.msra.mxu0 %v3666_v20 }
 0x4c6   : > { %3305 = vmatprep.subr.bf16.mxu0 %v4126_v42 }
 0x4c8   : > { %3280 = vmatpush3.bf16.msra.mxu1 %v3634_v36  ;;  %v3667_v36 = vld [vmem:[%s4597_s0] sm:$0xff]  }
 0x4c9   : > { %1610 = vmatprep.subr.bf16.mxu1 %v3637_v38 }
 0x57a   : > { %v1263_v51 = vpop.f32.mrb[4].mxu0 }
 0x57b   : > { %v3257_v52 = vpop.f32.mrb[5].mxu0 }
 0x57c   : > { %v1266_v53 = vpop.f32.mrb[6].mxu0  ;;  %v3674_v52 = vld [vmem:[%s4597_s0 + $0x38] sm:$0xff]  }
 0x57d   : > { %v3258_v54 = vpop.f32.mrb[7].mxu0  ;;  %v1465_v53 = vld [vmem:[%s4591_s3] sm:$0x7] }
 0x57e   : > { %v1309_v55 = vpop.f32.mrb[4].mxu1  ;;  %v1470_v54 = vrot.slane %v1465_v53, %v4667_v47 }
 0x57f   : > { %v1315_v57 = vpack.c.bf16 %v1309_v55, %v1263_v51  ;;  %v3263_v58 = vpop.f32.mrb[5].mxu1  ;;  %v3673_v51 = vld [vmem:[%s4597_s0 + $0x30] sm:$0xff]  }
 0x580   : > { %v1312_v61 = vpop.f32.mrb[6].mxu1 }
 0x581   : > { %v3264_v62 = vpop.f32.mrb[7].mxu1  ;;  %3282 = vmatmul.mubr.bf16.vlgmr.msra.gmra.mrb[8].mxu1 %v1315_v57 }
 0x582   : > { %1611 = vmatpush1.bf16.msra.mxu1 %v3635_v56  ;;  %1642 = vmatprep.mubr.bf16.mxu1 %v4128_v21 }
 0x583   : > { %1612 = vmatprep.subr.bf16.mxu1 %v3641_v60 }
 0x586   : > { %1613 = vmatpush1.bf16.msra.mxu1 %v3639_v63 }
 0x587   : > { %1614 = vmatprep.subr.bf16.mxu1 %v3645_v0 }
 0x58a   : > { %1615 = vmatpush1.bf16.msra.mxu1 %v3643_v1 }
 0x58b   : > { %1616 = vmatprep.subr.bf16.mxu1 %v3649_v2 }
 0x58e   : > { %1617 = vmatpush1.bf16.msra.mxu1 %v3647_v4 }
 0x58f   : > { %1618 = vmatprep.subr.bf16.mxu1 %v3653_v6  ;;  %v1478_v6 = vrot.slane %v1465_v53, %v4676_v59 }
 0x592   : > { %1619 = vmatpush1.bf16.msra.mxu1 %v3651_v7  ;;  %v1474_v7 = vrot.slane %v1465_v53, %v4671_v49 }
 0x593   : > { %1620 = vmatprep.subr.bf16.mxu1 %v3657_v10  ;;  %v3075_v10 = vld [vmem:[%s4581_s21] ss:$0 sm:$0xff] }
 0x596   : > { %1621 = vmatpush1.bf16.msra.mxu1 %v3655_v11  ;;  %v3409_v11 = vadd.f32 %v3075_v10, %v1478_v6 }
 0x597   : > { %1622 = vmatprep.subr.bf16.mxu1 %v3661_v14 }
 0x59a   : > { %1623 = vmatpush1.bf16.msra.mxu1 %v3659_v15 }
 0x59b   : > { %1624 = vmatprep.subr.bf16.mxu1 %v3665_v18 }
 0x59e   : > { %1625 = vmatpush1.bf16.msra.mxu1 %v3663_v19 }
 0x654   : > { %v1421_v23 = vpop.f32.mrb[8].mxu1 }
 0x655   : > { %v1422_v24 = vadd.f32 %v3042_v22, %v1421_v23  ;;  %v3283_v25 = vpop.f32.mrb[9].mxu1 }
 0x656   : > { %v1424_v28 = vpop.f32.mrb[10].mxu1 }
 0x657   : > { %v1428_v29 = vmax.f32 %v1422_v24, 0.0  ;;  %v1425_v31 = vadd.f32 %v3042_v22, %v1424_v28  ;;  %v3284_v32 = vpop.f32.mrb[11].mxu1 }
 0x659   : > { %v1429_v33 = vmax.f32 %v1425_v31, 0.0  ;;  %v1430_v34 = vadd.f32 %v1428_v29, %v4642_v26 }
 0x65b   : > { %v1431_v35 = vadd.f32 %v1429_v33, %v4644_v27 }
 0x65d   : > { %v1432_v38 = vpack.c.bf16 %v1431_v35, %v1430_v34 }
 0x65f   : > { %1643 = vmatmul.mubr.bf16.vlgmr.msra.gmra.mrb[12].mxu1 %v1432_v38  ;;  %3302 = vmatmul.mubr.bf16.vlgmr.msra.gmra.mrb[8].mxu0 %v1432_v38 }
 0x660   : > { %3306 = vmatpush3.bf16.msra.mxu0 %v3667_v36  ;;  %3321 = vmatprep.mubr.msk.bf16.mxu0 %vm4127_vm1, %v4126_v42 }
 0x661   : > { %3307 = vmatprep.subr.bf16.mxu0 %v4126_v42 }
 0x664   : > { %3308 = vmatpush3.bf16.msra.mxu0 %v3668_v40 }
 0x665   : > { %3309 = vmatprep.subr.bf16.mxu0 %v4126_v42 }
 0x668   : > { %3310 = vmatpush3.bf16.msra.mxu0 %v3669_v43 }
 0x669   : > { %3311 = vmatprep.subr.bf16.mxu0 %v4126_v42 }
 0x66c   : > { %3312 = vmatpush3.bf16.msra.mxu0 %v3670_v44 }
 0x66d   : > { %3313 = vmatprep.subr.bf16.mxu0 %v4126_v42 }
 0x670   : > { %3314 = vmatpush3.bf16.msra.mxu0 %v3671_v48 }
 0x671   : > { %3315 = vmatprep.subr.bf16.mxu0 %v4126_v42 }
 0x674   : > { %3316 = vmatpush3.bf16.msra.mxu0 %v3672_v50 }
 0x675   : > { %3317 = vmatprep.subr.bf16.mxu0 %v4126_v42 }
 0x678   : > { %3318 = vmatpush3.bf16.msra.mxu0 %v3673_v51 }
 0x679   : > { %3319 = vmatprep.subr.bf16.mxu0 %v4126_v42 }
 0x67c   : > { %3320 = vmatpush3.bf16.msra.mxu0 %v3674_v52 }
 0x732   : > { %v1644_v55 = vpop.f32.mrb[12].mxu1 }
 0x733   : > { %v1645_v56 = vadd.f32 %v1644_v55, %v1470_v54  ;;  %v1646_v57 = vpop.f32.mrb[13].mxu1 }
 0x734   : > { %v1648_v58 = vpop.f32.mrb[14].mxu1  ;;  %v1647_v12 = vadd.f32 %v1646_v57, %v1474_v7 }
 0x735   : > { %v1694_v60 = vadd.f32 %v1645_v56, %v4680_v3  ;;  %v1649_v61 = vadd.f32 %v1648_v58, %v1470_v54  ;;  %v1650_v62 = vpop.f32.mrb[15].mxu1 }
 0x736   : > { %v1651_v14 = vadd.f32 %v1650_v62, %v1474_v7  ;;  %v1698_v19 = vadd.f32 %v1647_v12, %v4689_v13 }
 0x737   : > { %v1696_v63 = vmax.f32 %v1694_v60, 0.0  ;;  %v1695_v0 = vadd.f32 %v1649_v61, %v4684_v8 }
 0x738   : > { %v1699_v23 = vadd.f32 %v1651_v14, %v4691_v16  ;;  %v1700_v24 = vmax.f32 %v1698_v19, 0.0 }
 0x739   : > { %v1697_v1 = vmax.f32 %v1695_v0, 0.0  ;;  %v1702_v42 = vmul.f32 %v1696_v63, %v4642_v26 }
 0x73a   : > { %v1701_v25 = vmax.f32 %v1699_v23, 0.0  ;;  %v1821_v28 = vsub.f32 1.0, %v1700_v24 }
 0x73b   : > { %v1703_v2 = vmul.f32 %v1697_v1, %v4644_v27 }
 0x73c   : > { %v1822_v29 = vsub.f32 1.0, %v1701_v25  ;;  %v1823_v32 = vmul.f32 %v1821_v28, %v4642_v26 }
 0x73d   : > { %v1704_v4 = vpack.c.bf16 %v1703_v2, %v1702_v42 }
 0x73e   : > { %v1824_v35 = vmul.f32 %v1822_v29, %v4644_v27 }
 0x73f   : > { %3322 = vmatmul.mubr.bf16.vlgmr.msra.gmra.mrb[8].mxu0 %v1704_v4 }
 0x812   : > { %v1810_v15 = vpop.f32.mrb[8].mxu0 }
 0x813   : > { %v3410_v17 = vadd.f32 %v3409_v11, %v1810_v15  ;;  %v3323_v18 = vpop.f32.mrb[9].mxu0 }
 0x814   : > { %v1813_v20 = vpop.f32.mrb[10].mxu0 }
 0x815   : > { %3683 = vtanh.f32 %v3410_v17  ;;  %v3412_v21 = vadd.f32 %v3409_v11, %v1813_v20  ;;  %v3324_v22 = vpop.f32.mrb[11].mxu0 }
 0x817   : > { %3685 = vtanh.f32 %v3412_v21 }
 0x81f   : > { %v3684_v31 = vpop.eup %3683 }
 0x820   : > { %v1825_v33 = vmul.f32 %v3684_v31, %v1700_v24 }
 0x821   : > { %v3686_v34 = vpop.eup %3685 }
 0x822   : > { %v1827_v36 = vadd.f32 %v1825_v33, %v1823_v32  ;;  %v1826_v38 = vmul.f32 %v3686_v34, %v1701_v25 }
 0x824   : > { %1829 = vst [vmem:[#allocation2] sm:$0xff] %v1827_v36  ;;  %1831 = vst [vmem:[%s4599_s6 - $0x6] sm:$0xc0] %v1827_v36  ;;  %v1828_v40 = vadd.f32 %v1826_v38, %v1824_v35 }
 0x826   : > { %1830 = vst [vmem:[#allocation2 + $0x8] sm:$0xff] %v1828_v40  ;;  %1832 = vst [vmem:[%s4599_s6 - $0x4] sm:$0xc0] %v1828_v40 }
 0x827 PF: > { %p3084_p7 = scmp.ne.s32.totalorder %s4244_s15, 1 }
 0x828   : > { %v1906_v43 = vpack.c.bf16 (!%p3084_p7), %v4693_v30, %v4693_v30  ;;  %v1907_v44 = vpack.c.bf16 (!%p3084_p7), %v4697_v39, %v4697_v39  ;;  %v4129_v48 = vmov (!%p3084_p7), 0.0   ;;  %vm4130_vm6 = vmmov (!%p3084_p7), 0   ;;  %v3688_v23 = vld [vmem:[%s4593_s5 + $0x8] sm:$0xff] (!%p3084_p7)   ;;  %v3689_v24 = vld [vmem:[%s4593_s5 + $0x10] sm:$0xff] (!%p3084_p7)   ;;  %v3690_v25 = vld [vmem:[%s4593_s5 + $0x18] sm:$0xff] (!%p3084_p7)  }
 0x829   : > { %1839 = sbr.rel (%p3084_p7) target bundleno = 3533 (0xdcd), region = 101  ;;  %3325 = vmatprep.subr.bf16.mxu0 (!%p3084_p7), %v4129_v48  ;;  %3331 = vmatprep.subr.bf16.mxu1 (!%p3084_p7), %v4129_v48  ;;  %v1912_v39 = vand.u32 (!%p3084_p7), 127, %v721_v45  ;;  %vm2001_vm8 = vcmask (!%p3084_p7), 58368   ;;  %vm2030_vm9 = vcmask (!%p3084_p7), 1043456   ;;  %vm2026_vm10 = vcmask (!%p3084_p7), 64512   ;;  %v3691_v28 = vld [vmem:[%s4593_s5 + $0x20] sm:$0xff] (!%p3084_p7)  }
 0x82a   : > { %3326 = vmatpush3.bf16.xpose.msra.mxu0 (!%p3084_p7), %v4695_v37  ;;  %3332 = vmatpush3.bf16.xpose.msra.mxu1 (!%p3084_p7), %v4699_v41  ;;  %v1916_v30 = vrot.slane (!%p3084_p7), %v1906_v43, 3  ;;  %v1959_v50 = vrot.slane (!%p3084_p7), %v1907_v44, 3  ;;  %v1910_v37 = vadd.s32 (!%p3084_p7), 6, %v4664_v46  ;;  %v2032_v12 = vsel (!%p3084_p7), %vm2030_vm9, %v4682_v5, 0  ;;  %v3692_v29 = vld [vmem:[%s4593_s5 + $0x28] sm:$0xff] (!%p3084_p7)   ;;  %v3693_v31 = vld [vmem:[%s4593_s5 + $0x30] sm:$0xff] (!%p3084_p7)  }
 0x82b   : > { %3327 = vmatprep.mubr.msk.bf16.mxu0 (!%p3084_p7), %vm4130_vm6, %v4129_v48  ;;  %3333 = vmatprep.mubr.msk.bf16.mxu1 (!%p3084_p7), %vm4130_vm6, %v4129_v48  ;;  %v2078_v14 = vsel (!%p3084_p7), %vm2030_vm9, %v4686_v9, 0  ;;  %v3687_v9 = vld [vmem:[%s4593_s5] sm:$0xff] (!%p3084_p7)   ;;  %v3694_v32 = vld [vmem:[%s4593_s5 + $0x38] sm:$0xff] (!%p3084_p7)   ;;  %v3698_v34 = vld [vmem:[%s4595_s2 + $0x8] ss:$12 sps:$4 sm:$0xff] (!%p3084_p7)  }
 0x82c   : > { %3337 = vmatprep.subr.bf16.mxu0 (!%p3084_p7), %v4129_v48  ;;  %3343 = vmatprep.subr.bf16.mxu1 (!%p3084_p7), %v4129_v48  ;;  %vm1913_vm7 = vcmp.gt.s32.totalorder (!%p3084_p7), %v1912_v39, %v1910_v37  ;;  %v3697_v33 = vld [vmem:[%s4595_s2 + $0x4] ss:$12 sps:$4 sm:$0xff] (!%p3084_p7)   ;;  %v3702_v35 = vld [vmem:[%s4595_s2 + $0x20] ss:$12 sps:$4 sm:$0xff] (!%p3084_p7)   ;;  %v3714_v40 = vld [vmem:[%s4595_s2 + $0x68] ss:$12 sps:$4 sm:$0xff] (!%p3084_p7)  }
 0x82d   : > { %v1914_v41 = vsel (!%p3084_p7), %vm1913_vm7, -1e+30, %v4129_v48  ;;  %v3706_v36 = vld [vmem:[%s4595_s2 + $0x38] ss:$12 sps:$4 sm:$0xff] (!%p3084_p7)   ;;  %v3710_v38 = vld [vmem:[%s4595_s2 + $0x50] ss:$12 sps:$4 sm:$0xff] (!%p3084_p7)  }
 0x82e   : > { %v3718_v43 = vld [vmem:[%s4595_s2 + $0x80] ss:$12 sps:$4 sm:$0xff] (!%p3084_p7)   ;;  %v4131_v44 = vmov (!%p3084_p7), 1983009808  }
 0x831   : > { %3328 = vmatmul.mubr.bf16.vlgmr.msra.gmra.mrb[0].mxu0 %v1916_v30  ;;  %3334 = vmatmul.mubr.bf16.vlgmr.msra.gmra.mrb[0].mxu1 %v1959_v50  ;;  %v1844_v30 = vunpack.c.l.s4 %v4131_v44  ;;  %v1864_v44 = vcombine.high %v4680_v3, %v4680_v3 }
 0x832   : > { %3339 = vmatprep.mubr.msk.bf16.mxu0 %vm4130_vm6, %v4129_v48  ;;  %3345 = vmatprep.mubr.msk.bf16.mxu1 %vm4130_vm6, %v4129_v48 }
 0x833   : > { %3338 = vmatpush3.bf16.msra.mxu0 %v2032_v12  ;;  %3344 = vmatpush3.bf16.msra.mxu1 %v2078_v14  ;;  %v1845_v50 = vunpack.c.0.s8 %v1844_v30  ;;  %v3725_v12 = vld [vmem:[%s4595_s2 + $0xac] ss:$12 sps:$4 sm:$0xff]   ;;  %v3723_v14 = vld [vmem:[%s4595_s2 + $0xa8] ss:$12 sps:$4 sm:$0xff]   ;;  %v2287_v30 = vld [vmem:[%s4591_s3] sm:$0x7] }
 0x834   : > { %3369 = vmatprep.subr.bf16.mxu0 %v4129_v48  ;;  %3349 = vmatprep.subr.bf16.mxu1 %v4129_v48 }
 0x904   : > { %v1952_v51 = vpop.f32.mrb[0].mxu0  ;;  %v1995_v52 = vpop.f32.mrb[0].mxu1 }
 0x905   : > { %v1953_v53 = vadd.f32 %v1952_v51, %v1914_v41  ;;  %v3329_v54 = vpop.f32.mrb[1].mxu0  ;;  %v1996_v55 = vadd.f32 %v1995_v52, %v1914_v41  ;;  %v3335_v56 = vpop.f32.mrb[1].mxu1  ;;  %v4888_v52 = vsub.s32 %v1845_v50, %v4664_v46  ;;  %v3699_v46 = vld [vmem:[%s4595_s2 + $0x18] ss:$12 sps:$4 sm:$0xff]   ;;  %v1886_v50 = vcombine.high %v4689_v13, %v4689_v13 }
 0x906   : > { %v1955_v57 = vpop.f32.mrb[2].mxu0  ;;  %v1998_v58 = vpop.f32.mrb[2].mxu1 }
 0x907   : > { %v3330_v60 = vpop.f32.mrb[3].mxu0  ;;  %v3336_v61 = vpop.f32.mrb[3].mxu1  ;;  %v2002_v62 = vsel %vm2001_vm8, %v1953_v53, -inf  ;;  %v2005_v63 = vsel %vm2001_vm8, %v1996_v55, -inf }
 0x908   : > { %2003 = vmax.xlane.f32.xlu0 %v2002_v62  ;;  %v3695_v60 = vld [vmem:[%s4595_s2] ss:$12 sps:$4 sm:$0xff]   ;;  %v3701_v62 = vld [vmem:[%s4595_s2 + $0x1c] ss:$12 sps:$4 sm:$0xff]  }
 0x90c   : > { %2006 = vmax.xlane.f32.xlu0 %v2005_v63  ;;  %v3705_v63 = vld [vmem:[%s4595_s2 + $0x34] ss:$12 sps:$4 sm:$0xff]  }
 0x995   : > { %v2004_v45 = vpop.xlane.xlu0 %2003 }
 0x996   : > { %v2008_v0 = vsub.f32 %v1953_v53, %v2004_v45  ;;  %v3703_v45 = vld [vmem:[%s4595_s2 + $0x30] ss:$12 sps:$4 sm:$0xff]  }
 0x998   : > { %v2010_v1 = vmul.f32 1.442695, %v2008_v0  ;;  %v3709_v0 = vld [vmem:[%s4595_s2 + $0x4c] ss:$12 sps:$4 sm:$0xff]  }
 0x999   : > { %v2007_v42 = vpop.xlane.xlu0 %2006 }
 0x99a   : > { %3735 = vpow2.f32 %v2010_v1  ;;  %v2009_v2 = vsub.f32 %v1996_v55, %v2007_v42  ;;  %v3707_v1 = vld [vmem:[%s4595_s2 + $0x48] ss:$12 sps:$4 sm:$0xff]   ;;  %v3713_v42 = vld [vmem:[%s4595_s2 + $0x64] ss:$12 sps:$4 sm:$0xff]  }
 0x99c   : > { %v2012_v4 = vmul.f32 1.442695, %v2009_v2  ;;  %v3711_v2 = vld [vmem:[%s4595_s2 + $0x60] ss:$12 sps:$4 sm:$0xff]  }
 0x99e   : > { %3737 = vpow2.f32 %v2012_v4  ;;  %v3717_v4 = vld [vmem:[%s4595_s2 + $0x7c] ss:$12 sps:$4 sm:$0xff]  }
 0x9a4   : > { %v3736_v6 = vpop.eup %3735 }
 0x9a5   : > { %v2014_v7 = vsel %vm2001_vm8, %v3736_v6, 0.0 }
 0x9a6   : > { %2015 = vadd.xlane.f32.xlu1 %v2014_v7  ;;  %v3721_v7 = vld [vmem:[%s4595_s2 + $0x94] ss:$12 sps:$4 sm:$0xff]  }
 0x9a8   : > { %v3738_v10 = vpop.eup %3737 }
 0x9a9   : > { %v2017_v11 = vsel %vm2001_vm8, %v3738_v10, 0.0 }
 0x9aa   : > { %2018 = vadd.xlane.f32.xlu1 %v2017_v11  ;;  %v3722_v11 = vld [vmem:[%s4595_s2 + $0x98] ss:$12 sps:$4 sm:$0xff]  }
 0xa33   : > { %v2016_v15 = vpop.xlane.xlu1 %2015 }
 0xa34   : > { %3739 = vrcp.f32 %v2016_v15  ;;  %v3726_v15 = vld [vmem:[%s4595_s2 + $0xb0] ss:$12 sps:$4 sm:$0xff]  }
 0xa37   : > { %v2019_v17 = vpop.xlane.xlu1 %2018 }
 0xa38   : > { %3741 = vrcp.f32 %v2019_v17  ;;  %v4132_v17 = vmov 0  }
 0xa3e   : > { %v3740_v18 = vpop.eup %3739 }
 0xa3f   : > { %v2022_v19 = vmul.f32 %v3740_v18, %v3736_v6  ;;  %v3715_v6 = vld [vmem:[%s4595_s2 + $0x78] ss:$12 sps:$4 sm:$0xff]   ;;  %v1842_v18 = vcombine.high %v4642_v26, %v4642_v26 }
 0xa41   : > { %2691 = vst.msk [vmem:[%s4601_s20] sm:$0x3] %vm2001_vm8, %v2022_v19  ;;  %v2024_v5 = vpack.c.bf16 %v2022_v19, %v2022_v19  ;;  %v1851_v19 = vcombine.high %v4644_v27, %v4644_v27 }
 0xa42   : > { %v3742_v20 = vpop.eup %3741 }
 0xa43   : > { %v2023_v21 = vmul.f32 %v3742_v20, %v3738_v10  ;;  %3340 = vmatmul.mubr.msk.bf16.vlgmr.msra.gmra.mrb[4].mxu0 %vm2026_vm10, %v2024_v5  ;;  %v3719_v10 = vld [vmem:[%s4595_s2 + $0x90] ss:$12 sps:$4 sm:$0xff]   ;;  %v1849_v5 = vrot.slane %v1842_v18, %v4888_v52  ;;  %v4916_v20 = vrot.slane %v1851_v19, %v4888_v52 }
 0xa44   : > { %3385 = vmatprep.mubr.msk.bf16.mxu0 %vm4130_vm6, %v4129_v48  ;;  %3370 = vmatpush3.bf16.msra.mxu0 %v3698_v34  ;;  %v3729_v34 = vld [vmem:[%s4597_s0 + $0x10] sm:$0xff]  }
 0xa45   : > { %2692 = vst.msk [vmem:[%s4601_s20 + $0x2] sm:$0x3] %vm2001_vm8, %v2023_v21  ;;  %v2025_v22 = vpack.c.bf16 %v2023_v21, %v2023_v21  ;;  %3371 = vmatprep.subr.bf16.mxu0 %v4129_v48  ;;  %v3096_v21 = vcombine.high %v1849_v5, %v4916_v20 }
 0xa47   : > { %3346 = vmatmul.mubr.msk.bf16.vlgmr.msra.gmra.mrb[4].mxu1 %vm2026_vm10, %v2025_v22 }
 0xa48   : > { %3350 = vmatpush3.bf16.msra.mxu1 %v3687_v9  ;;  %3365 = vmatprep.mubr.msk.bf16.mxu1 %vm4130_vm6, %v4129_v48  ;;  %v3087_v9 = vld [vmem:[%s4576_s30] ss:$0 sm:$0xff] }
 0xa49   : > { %3351 = vmatprep.subr.bf16.mxu1 %v4129_v48  ;;  %3372 = vmatpush3.bf16.msra.mxu0 %v3702_v35  ;;  %v3730_v35 = vld [vmem:[%s4597_s0 + $0x18] sm:$0xff]  }
 0xa4a   : > { %3373 = vmatprep.subr.bf16.mxu0 %v4129_v48 }
 0xa4c   : > { %3352 = vmatpush3.bf16.msra.mxu1 %v3688_v23 }
 0xa4d   : > { %3353 = vmatprep.subr.bf16.mxu1 %v4129_v48  ;;  %3374 = vmatpush3.bf16.msra.mxu0 %v3706_v36  ;;  %v3731_v36 = vld [vmem:[%s4597_s0 + $0x20] sm:$0xff]  }
 0xa4e   : > { %3375 = vmatprep.subr.bf16.mxu0 %v4129_v48 }
 0xa50   : > { %3354 = vmatpush3.bf16.msra.mxu1 %v3689_v24  ;;  %v2251_v24 = vrot.slane %v3096_v21, %v4888_v52 }
 0xa51   : > { %3355 = vmatprep.subr.bf16.mxu1 %v4129_v48  ;;  %3376 = vmatpush3.bf16.msra.mxu0 %v3710_v38  ;;  %v3732_v38 = vld [vmem:[%s4597_s0 + $0x28] sm:$0xff]  }
 0xa52   : > { %3377 = vmatprep.subr.bf16.mxu0 %v4129_v48 }
 0xa54   : > { %3356 = vmatpush3.bf16.msra.mxu1 %v3690_v25 }
 0xa55   : > { %3357 = vmatprep.subr.bf16.mxu1 %v4129_v48  ;;  %3378 = vmatpush3.bf16.msra.mxu0 %v3714_v40  ;;  %v3733_v40 = vld [vmem:[%s4597_s0 + $0x30] sm:$0xff]  }
 0xa56   : > { %3379 = vmatprep.subr.bf16.mxu0 %v4129_v48 }
 0xa58   : > { %3358 = vmatpush3.bf16.msra.mxu1 %v3691_v28 }
 0xa59   : > { %3359 = vmatprep.subr.bf16.mxu1 %v4129_v48  ;;  %3380 = vmatpush3.bf16.msra.mxu0 %v3718_v43  ;;  %v3734_v43 = vld [vmem:[%s4597_s0 + $0x38] sm:$0xff]  }
 0xa5a   : > { %3381 = vmatprep.subr.bf16.mxu0 %v4129_v48 }
 0xa5c   : > { %3360 = vmatpush3.bf16.msra.mxu1 %v3692_v29 }
 0xa5d   : > { %3361 = vmatprep.subr.bf16.mxu1 %v4129_v48  ;;  %3382 = vmatpush3.bf16.msra.mxu0 %v3722_v11 }
 0xa5e   : > { %3383 = vmatprep.subr.bf16.mxu0 %v4129_v48 }
 0xa60   : > { %3362 = vmatpush3.bf16.msra.mxu1 %v3693_v31  ;;  %v3727_v31 = vld [vmem:[%s4597_s0] sm:$0xff]  }
 0xa61   : > { %3363 = vmatprep.subr.bf16.mxu1 %v4129_v48  ;;  %3384 = vmatpush3.bf16.msra.mxu0 %v3726_v15 }
 0xa62   : > { %3389 = vmatprep.subr.bf16.mxu0 %v4129_v48 }
 0xa64   : > { %3364 = vmatpush3.bf16.msra.mxu1 %v3694_v32 }
 0xa65   : > { %2432 = vmatprep.subr.bf16.mxu1 %v3697_v33  ;;  %v3728_v33 = vld [vmem:[%s4597_s0 + $0x8] sm:$0xff]  }
 0xb16   : > { %v2068_v37 = vpop.f32.mrb[4].mxu0 }
 0xb17   : > { %v3341_v39 = vpop.f32.mrb[5].mxu0 }
 0xb18   : > { %v2071_v41 = vpop.f32.mrb[6].mxu0  ;;  %v1895_v39 = vcombine.high %v4691_v16, %v4691_v16 }
 0xb19   : > { %v3342_v51 = vpop.f32.mrb[7].mxu0  ;;  %v1871_v41 = vrot.slane %v1864_v44, %v4888_v52 }
 0xb1a   : > { %v2114_v53 = vpop.f32.mrb[4].mxu1  ;;  %v2292_v51 = vrot.slane %v2287_v30, %v4667_v47 }
 0xb1b   : > { %v2122_v54 = vcombine.low %v2068_v37, %v2114_v53  ;;  %v3347_v55 = vpop.f32.mrb[5].mxu1  ;;  %v1873_v37 = vcombine.high %v4684_v8, %v4684_v8  ;;  %v2296_v53 = vrot.slane %v2287_v30, %v4671_v49  ;;  %v1872_v13 = vcombine.high %v1871_v41, %v1871_v41 }
 0xb1c   : > { %v2117_v56 = vpop.f32.mrb[6].mxu1  ;;  %v1902_v55 = vrot.slane %v1895_v39, %v4888_v52 }
 0xb1d   : > { %v2129_v57 = vrot.slane %v2122_v54, %v4888_v52  ;;  %v3348_v58 = vpop.f32.mrb[7].mxu1  ;;  %v1880_v3 = vrot.slane %v1873_v37, %v4888_v52 }
 0xb1e   : > { %v1903_v47 = vcombine.high %v1902_v55, %v1902_v55 }
 0xb1f   : > { %v2131_v61 = vpack.c.bf16 %v2129_v57, %v2129_v57  ;;  %v1881_v16 = vcombine.high %v1880_v3, %v1880_v3 }
 0xb21   : > { %3366 = vmatmul.mubr.bf16.vlgmr.msra.gmra.mrb[8].mxu1 %v2131_v61 }
 0xb22   : > { %2433 = vmatpush1.bf16.msra.mxu1 %v3695_v60  ;;  %2464 = vmatprep.mubr.bf16.mxu1 %v4132_v17 }
 0xb23   : > { %2434 = vmatprep.subr.bf16.mxu1 %v3701_v62 }
 0xb26   : > { %2435 = vmatpush1.bf16.msra.mxu1 %v3699_v46 }
 0xb27   : > { %2436 = vmatprep.subr.bf16.mxu1 %v3705_v63  ;;  %v1850_v63 = vcombine.high %v1849_v5, %v1849_v5 }
 0xb2a   : > { %2437 = vmatpush1.bf16.msra.mxu1 %v3703_v45 }
 0xb2b   : > { %2438 = vmatprep.subr.bf16.mxu1 %v3709_v0 }
 0xb2e   : > { %2439 = vmatpush1.bf16.msra.mxu1 %v3707_v1 }
 0xb2f   : > { %2440 = vmatprep.subr.bf16.mxu1 %v3713_v42  ;;  %v1859_v42 = vcombine.high %v4916_v20, %v4916_v20  ;;  %v2300_v20 = vrot.slane %v2287_v30, %v4676_v59 }
 0xb32   : > { %2441 = vmatpush1.bf16.msra.mxu1 %v3711_v2 }
 0xb33   : > { %2442 = vmatprep.subr.bf16.mxu1 %v3717_v4 }
 0xb36   : > { %2443 = vmatpush1.bf16.msra.mxu1 %v3715_v6 }
 0xb37   : > { %2444 = vmatprep.subr.bf16.mxu1 %v3721_v7 }
 0xb3a   : > { %2445 = vmatpush1.bf16.msra.mxu1 %v3719_v10 }
 0xb3b   : > { %2446 = vmatprep.subr.bf16.mxu1 %v3725_v12 }
 0xb3e   : > { %2447 = vmatpush1.bf16.msra.mxu1 %v3723_v14 }
 0xbf4   : > { %v2237_v22 = vpop.f32.mrb[8].mxu1 }
 0xbf5   : > { %v2238_v23 = vadd.f32 %v3087_v9, %v2237_v22  ;;  %v3367_v25 = vpop.f32.mrb[9].mxu1  ;;  %v3121_v22 = vld [vmem:[%s4581_s21] ss:$0 sm:$0xff] }
 0xbf6   : > { %v2240_v28 = vpop.f32.mrb[10].mxu1 }
 0xbf7   : > { %v2243_v26 = vmax.f32 %v2238_v23, 0.0  ;;  %v3368_v29 = vpop.f32.mrb[11].mxu1  ;;  %v3417_v23 = vadd.f32 %v3121_v22, %v2300_v20 }
 0xbf9   : > { %v2253_v27 = vadd.f32 %v2251_v24, %v2243_v26 }
 0xbfb   : > { %v2254_v32 = vpack.c.bf16 %v2253_v27, %v2253_v27 }
 0xbfd   : > { %2465 = vmatmul.mubr.bf16.vlgmr.msra.gmra.mrb[12].mxu1 %v2254_v32  ;;  %3386 = vmatmul.mubr.bf16.vlgmr.msra.gmra.mrb[8].mxu0 %v2254_v32 }
 0xbfe   : > { %3390 = vmatpush3.bf16.msra.mxu0 %v3727_v31  ;;  %3405 = vmatprep.mubr.msk.bf16.mxu0 %vm4130_vm6, %v4129_v48 }
 0xbff   : > { %3391 = vmatprep.subr.bf16.mxu0 %v4129_v48 }
 0xc02   : > { %3392 = vmatpush3.bf16.msra.mxu0 %v3728_v33 }
 0xc03   : > { %3393 = vmatprep.subr.bf16.mxu0 %v4129_v48 }
 0xc06   : > { %3394 = vmatpush3.bf16.msra.mxu0 %v3729_v34 }
 0xc07   : > { %3395 = vmatprep.subr.bf16.mxu0 %v4129_v48 }
 0xc0a   : > { %3396 = vmatpush3.bf16.msra.mxu0 %v3730_v35 }
 0xc0b   : > { %3397 = vmatprep.subr.bf16.mxu0 %v4129_v48 }
 0xc0e   : > { %3398 = vmatpush3.bf16.msra.mxu0 %v3731_v36 }
 0xc0f   : > { %3399 = vmatprep.subr.bf16.mxu0 %v4129_v48 }
 0xc12   : > { %3400 = vmatpush3.bf16.msra.mxu0 %v3732_v38 }
 0xc13   : > { %3401 = vmatprep.subr.bf16.mxu0 %v4129_v48 }
 0xc16   : > { %3402 = vmatpush3.bf16.msra.mxu0 %v3733_v40 }
 0xc17   : > { %3403 = vmatprep.subr.bf16.mxu0 %v4129_v48  ;;  %v1893_v48 = vrot.slane %v1886_v50, %v4888_v52 }
 0xc19   : > { %v1894_v8 = vcombine.high %v1893_v48, %v1893_v48 }
 0xc1a   : > { %3404 = vmatpush3.bf16.msra.mxu0 %v3734_v43 }
 0xcd0   : > { %v2466_v54 = vpop.f32.mrb[12].mxu1 }
 0xcd1   : > { %v2467_v56 = vadd.f32 %v2466_v54, %v2292_v51  ;;  %v2468_v57 = vpop.f32.mrb[13].mxu1 }
 0xcd2   : > { %v2469_v58 = vadd.f32 %v2468_v57, %v2296_v53  ;;  %v2470_v60 = vpop.f32.mrb[14].mxu1 }
 0xcd3   : > { %v2520_v61 = vrot.slane %v2467_v56, %v4888_v52  ;;  %v2471_v62 = vpop.f32.mrb[15].mxu1 }
 0xcd4   : > { %v2535_v46 = vrot.slane %v2469_v58, %v4888_v52 }
 0xcd5   : > { %v2521_v49 = vcombine.high %v2520_v61, %v2520_v61  ;;  %v2524_v45 = vadd.f32 %v2520_v61, %v1872_v13 }
 0xcd6   : > { %v2536_v0 = vcombine.high %v2535_v46, %v2535_v46  ;;  %v2539_v1 = vadd.f32 %v2535_v46, %v1894_v8 }
 0xcd7   : > { %v2525_v2 = vadd.f32 %v2521_v49, %v1881_v16  ;;  %v2526_v4 = vmax.f32 %v2524_v45, 0.0 }
 0xcd8   : > { %v2540_v6 = vadd.f32 %v2536_v0, %v1903_v47  ;;  %v2541_v7 = vmax.f32 %v2539_v1, 0.0 }
 0xcd9   : > { %v2527_v10 = vmax.f32 %v2525_v2, 0.0  ;;  %v2543_v11 = vmul.f32 %v2526_v4, %v1850_v63 }
 0xcda   : > { %v2542_v12 = vmax.f32 %v2540_v6, 0.0  ;;  %v2670_v14 = vsub.f32 1.0, %v2541_v7 }
 0xcdb   : > { %v2544_v15 = vmul.f32 %v2527_v10, %v1859_v42 }
 0xcdc   : > { %v2671_v17 = vsub.f32 1.0, %v2542_v12  ;;  %v2672_v18 = vmul.f32 %v2670_v14, %v1850_v63 }
 0xcdd   : > { %v2547_v19 = vcombine.low %v2543_v11, %v2544_v15 }
 0xcde   : > { %v2673_v5 = vmul.f32 %v2671_v17, %v1859_v42 }
 0xcdf   : > { %v2554_v21 = vrot.slane %v2547_v19, %v4888_v52 }
 0xce1   : > { %v2556_v9 = vpack.c.bf16 %v2554_v21, %v2554_v21 }
 0xce3   : > { %3406 = vmatmul.mubr.bf16.vlgmr.msra.gmra.mrb[8].mxu0 %v2556_v9 }
 0xdb6   : > { %v2662_v24 = vpop.f32.mrb[8].mxu0 }
 0xdb7   : > { %v3418_v25 = vadd.f32 %v3417_v23, %v2662_v24  ;;  %v3407_v28 = vpop.f32.mrb[9].mxu0 }
 0xdb8   : > { %v2665_v26 = vpop.f32.mrb[10].mxu0 }
 0xdb9   : > { %3743 = vtanh.f32 %v3418_v25  ;;  %v3408_v29 = vpop.f32.mrb[11].mxu0 }
 0xdc3   : > { %v3744_v27 = vpop.eup %3743 }
 0xdc4   : > { %v2681_v31 = vrot.slane %v3744_v27, %v4888_v52 }
 0xdc6   : > { %v2682_v32 = vcombine.high %v2681_v31, %v2681_v31  ;;  %v2685_v33 = vmul.f32 %v2681_v31, %v2541_v7 }
 0xdc8   : > { %v2686_v34 = vmul.f32 %v2682_v32, %v2542_v12  ;;  %v2687_v35 = vadd.f32 %v2685_v33, %v2672_v18 }
 0xdca   : > { %v2688_v36 = vadd.f32 %v2686_v34, %v2673_v5  ;;  %2689 = vst [vmem:[#allocation12] sm:$0x3] %v2687_v35 }
 0xdcc   : > { %2690 = vst [vmem:[#allocation12 + $0x2] sm:$0x3] %v2688_v36 }
 0xdcd PF: > { %s5204_s3 = sld [smem:[#allocation32_spill]]  ;;  %p2719_p10 = scmp.lt.s32.totalorder %s4244_s15, 0 }
 0xdce   : > { %s2726_s5 = sshll.u32 %s4599_s6, 4  ;;  %s4133_s30 = smov [#allocation12]   ;;  %s4964_s5 = int_to_ptr.vmem [resolvable:$true] %s2726_s5 }
 0xdcf   : > { %s2720_s4 = scalar_select %p2719_p10, %s4244_s15, 0 }
 0xdd0   : > { %s2709_s21 = sshll.u32 %s4133_s30, 4  ;;  %s5205_s0 = sld [smem:[#allocation47_spill]]  ;;  %s4966_s21 = int_to_ptr.vmem [resolvable:$true] %s2709_s21 }
 0xdd1   : > { %s3133_s24 = sshll.u32 %s2720_s4, 5  ;;  %s3141_s16 = sshll.u32 %s4244_s15, 6 }
 0xdd2   : > { %s5206_s22 = sand.u32 1, %s4244_s15   ;;  %s3943_s6 = scalar_lea.vmem %s4964_s5, 64 }
 0xdd3   : > { %s4976_s8 = scalar_lea.sflag [#allocation14], %s5206_s22  ;;  %p3944_p0 = scmp.ne.s32.totalorder %s4964_s5, %s3943_s6 }
 0xdd4   : > { %p5207_p3 = scmp.ne.s32.totalorder %s5204_s3, 0  ;;  %s4134_s18 = smov [#allocation13]  }
 0xdd5   : > { %s3947_s17 = sshll.u32 %s4134_s18, 4  ;;  %s3948_s17 = int_to_ptr.vmem [resolvable:$false] %s3947_s17 }
 0xdd6   : > { %s4971_s12 = scalar_lea.hbm %s5205_s0, %s3133_s24  ;;  %p3945_p5 = pnand %p3944_p0, %p5207_p3 }
 0xdd7   : > { %s3949_s19 = scalar_lea.vmem %s3948_s17, 128  ;;  %p3950_p8 = scmp.lt.s32.totalorder %s4964_s5, %s3948_s17 }
 0xdd8   : > { %p3946_p4 = pneg %p3945_p5  ;;  %p3951_p9 = scmp.lt.s32.totalorder %s3949_s19, %s3943_s6 }
 0xdda   : > { %p3952_p11 = por %p3951_p9, %p3950_p8 }
 0xddc   : > { %p3953_p13 = pnand %p3952_p11, %p3946_p4 }
 0xdde   : > { %3956 = shalt.err (!%p3953_p13)
}
 0xddf   : > { %s3957_s10 = scalar_lea.hbm %s4971_s12, 64  ;;  %s3961_s28 = scalar_lea.hbm %s5205_s0, 64 }
 0xde0   : > { %p3958_p2 = scmp.ne.s32.totalorder %s4971_s12, %s3957_s10  ;;  %p3962_p12 = scmp.lt.u32.totalorder %s4971_s12, %s5205_s0 }
 0xde1   : > { %p3963_p7 = scmp.lt.u32.totalorder %s3961_s28, %s3957_s10  ;;  %p3965_p0 = scmp.lt.u32.totalorder %s3957_s10, %s4971_s12 }
 0xde2   : > { %p3959_p6 = pnand %p3958_p2, %p5207_p3 }
 0xde3   : > { %p3964_p10 = por %p3963_p7, %p3962_p12 }
 0xde4   : > { %p3960_p1 = pneg %p3959_p6 }
 0xde5   : > { %p3966_p5 = por %p3965_p0, %p3964_p10 }
 0xde7   : > { %p3967_p4 = pnand %p3966_p5, %p3960_p1 }
 0xde9   : > { %3970 = shalt.err (!%p3967_p4)
}
 0xdea   : > { %s4135_s4 = smov 32   ;;  %s4136_s30 = smov 2  }
 0xdeb   : > { %3449 = dma.vmem_to_hbm [thread:$0]  (%p5207_p3), %s4964_s5, 64, %s4971_s12, %s4976_s8, %s4135_s4, %s4135_s4, %s4136_s30  }
 0xdec   : > { %s3971_s24 = scalar_lea.vmem %s4966_s21, 64  ;;  %p5208_p9 = scmp.eq.s32.totalorder %s4244_s15, 1 }
 0xded   : > { %p3972_p8 = scmp.ne.s32.totalorder %s4966_s21, %s3971_s24  ;;  %p3978_p2 = scmp.lt.s32.totalorder %s4966_s21, %s4966_s21 }
 0xdee   : > { %p3979_p6 = scmp.lt.s32.totalorder %s3971_s24, %s3971_s24 }
 0xdef   : > { %p3973_p11 = pnand %p3972_p8, %p5208_p9 }
 0xdf0   : > { %p3980_p1 = por %p3979_p6, %p3978_p2 }
 0xdf1   : > { %p3974_p13 = pneg %p3973_p11 }
 0xdf3   : > { %p3981_p12 = pnand %p3980_p1, %p3974_p13 }
 0xdf5   : > { %3984 = shalt.err (!%p3981_p12)
}
 0xdf6   : > { %s5209_s22 = sld [smem:[#allocation46_spill]]  ;;  %p5210_p7 = pmov %p5208_p9 }
 0xdfc   : > { %s3985_s3 = scalar_lea.hbm %s5209_s22, 64 }
 0xdfd   : > { %p3986_p3 = scmp.ne.s32.totalorder %s5209_s22, %s3985_s3  ;;  %p3991_p5 = scmp.lt.u32.totalorder %s3985_s3, %s5209_s22 }
 0xdff   : > { %p3987_p10 = pnand %p3986_p3, %p5210_p7 }
 0xe01   : > { %p3988_p0 = pneg %p3987_p10 }
 0xe03   : > { %p3993_p4 = pnand %p3991_p5, %p3988_p0 }
 0xe05   : > { %3996 = shalt.err (!%p3993_p4)
}
 0xe06   : > { %p5211_p8 = pmov %p5210_p7  ;;  %s5212_s10 = sld [smem:[#allocation34_spill]] }
 0xe07   : > { %s5213_s28 = sld [smem:[#allocation48_spill]]  ;;  %s2742_s24 = sshll.u32 %s4601_s20, 4  ;;  %s5037_s24 = int_to_ptr.vmem [resolvable:$true] %s2742_s24 }
 0xe08   : > { %3448 = dma.vmem_to_hbm [thread:$0]  (%p5211_p8), %s4966_s21, 64, %s5209_s22, [#allocation5], %s4135_s4, %s4135_s4, %s4136_s30  }
 0xe09   : > { %s3997_s13 = scalar_lea.vmem %s5037_s24, 64  ;;  %s4137_s2 = smov [#allocation15]  }
 0xe0a   : > { %p3998_p9 = scmp.ne.s32.totalorder %s5037_s24, %s3997_s13  ;;  %s4001_s3 = sshll.u32 %s4137_s2, 4  ;;  %s4002_s3 = int_to_ptr.vmem [resolvable:$false] %s4001_s3 }
 0xe0b   : > { %s4003_s21 = scalar_lea.vmem %s4002_s3, 128  ;;  %p4004_p6 = scmp.lt.s32.totalorder %s5037_s24, %s4002_s3 }
 0xe0c   : > { %p5215_p11 = scmp.ne.s32.totalorder %s5212_s10, 0  ;;  %p4005_p1 = scmp.lt.s32.totalorder %s4003_s21, %s3997_s13 }
 0xe0d   : > { %s5214_s11 = smov %s5213_s28  ;;  %s5034_s27 = scalar_lea.hbm %s5213_s28, %s3141_s16 }
 0xe0e   : > { %p3999_p13 = pnand %p3998_p9, %p5215_p11  ;;  %p4006_p12 = por %p4005_p1, %p4004_p6 }
 0xe10   : > { %p4000_p2 = pneg %p3999_p13 }
 0xe12   : > { %p4007_p3 = pnand %p4006_p12, %p4000_p2 }
 0xe14   : > { %4010 = shalt.err (!%p4007_p3)
}
 0xe15   : > { %s4011_s20 = scalar_lea.hbm %s5034_s27, 64  ;;  %s4015_s18 = scalar_lea.hbm %s5214_s11, 128 }
 0xe16   : > { %p4012_p7 = scmp.ne.s32.totalorder %s5034_s27, %s4011_s20  ;;  %p4016_p5 = scmp.lt.u32.totalorder %s5034_s27, %s5214_s11 }
 0xe17   : > { %p4017_p4 = scmp.lt.u32.totalorder %s4015_s18, %s4011_s20  ;;  %p4019_p9 = scmp.lt.u32.totalorder %s4011_s20, %s5034_s27 }
 0xe18   : > { %p4013_p10 = pnand %p4012_p7, %p5215_p11 }
 0xe19   : > { %p4018_p8 = por %p4017_p4, %p4016_p5 }
 0xe1a   : > { %p4014_p0 = pneg %p4013_p10 }
 0xe1b   : > { %p4020_p13 = por %p4019_p9, %p4018_p8 }
 0xe1d   : > { %p4021_p2 = pnand %p4020_p13, %p4014_p0 }
 0xe1f   : > { %4024 = shalt.err (!%p4021_p2)
}
 0xe20   : > { %3450 = dma.vmem_to_hbm [thread:$0]  (%p5215_p11), %s5037_s24, 64, %s5034_s27, %s4976_s8, %s4135_s4, %s4135_s4, %s4136_s30  }
 0xe21   : > { %p5216_p6 = scmp.eq.s32.totalorder %s4244_s15, 1 }
 0xe23   : > { %4068 = dma.done.wait (%p5216_p6), [#allocation5], 64   ;;  %p5217_p1 = pmov %p5216_p6 }
 0xe25   : > { %4070 = vsyncadd (%p5217_p1), [#allocation5], 4294967232 }
 0xe26 PF: > { %s5218_s17 = sadd.s32 4294967294, %s4105_s14   ;;  %s5219_s19 = sld [smem:[#allocation33_spill]] }
 0xe27   : > { %s2761_s25 = sand.u32 1, %s5218_s17   ;;  %p5221_p3 = scmp.ge.s32.totalorder %s4105_s14, 2 }
 0xe28   : > { %s2762_s10 = scalar_lea.sflag [#allocation14], %s2761_s25 }
 0xe2c   : > { %p5220_p12 = scmp.ne.s32.totalorder %s5219_s19, 0 }
 0xe2e   : > { %p3476_p7 = pnand %p5221_p3, %p5220_p12 }
 0xe30   : > { %4072 = dma.done.wait (!%p3476_p7), %s2762_s10, 64  }
 0xe31   : > { %4074 = vsyncadd (!%p3476_p7), %s2762_s10, 4294967232  ;;  %s5222_s23 = sld [smem:[#allocation36_spill]]  ;;  %p5224_p11 = pmov %p5221_p3 }
 0xe37   : > { %p5223_p10 = scmp.ne.s32.totalorder %s5222_s23, 0 }
 0xe39   : > { %p3479_p0 = pnand %p5224_p11, %p5223_p10 }
 0xe3b   : > { %4076 = dma.done.wait (!%p3479_p0), %s2762_s10, 64  }
 0xe3c   : > { %4078 = vsyncadd (!%p3479_p0), %s2762_s10, 4294967232  ;;  %s5225_s14 = sld [smem:[#allocation30_spill]]  ;;  %s5226_s15 = sld [smem:[#allocation28_spill]] }
 0xe3d   : > { %s5227_s27 = sld [smem:[#allocation35_spill]]  ;;  %s5228_s8 = sld [smem:[#allocation29_spill]] }
 0xe3e   : > { %s5229_s30 = sld [smem:[#allocation31_spill]]  ;;  %s5230_s25 = smov %s4085_s26 }
 0xe3f   : > { %s5232_s28 = smov %s4097_s29 }
 0xe42   : > { %p27_p5 = scmp.ge.s32.totalorder %s5225_s14, 4   ;;  %s5231_s26 = smov %s5226_s15 }
 0xe43   : > { %s5233_s29 = smov %s5228_s8 }
 0xe44   :  { %29 = sbr.rel (!%p27_p5) target bundleno = 21 (0x15), region = 198 }
 0xe4b   :  { %2776 = vsyncpa [#allocation4], 1 }
 0xe4c   :  { %2778 = vsyncpa [#allocation4 + $0x1], 1 }
 0xe4d   :  { %2779 = vsyncpa [#allocation7], 1 }
 0xe4e   :  { %2780 = vsyncpa [#allocation5], 1 }
 0xe4f   :  { %2782 = vsyncpa [#allocation5 + $0x1], 1 }
 0xe50   :  { %2783 = vsyncpa [#allocation14], 1 }
 0xe51   :  { %2785 = vsyncpa [#allocation14 + $0x1], 1 }

</bundles_post_ra>
